<compile_context>
chip_gen: v5e
topology: v5e:2x2
jax: 0.10.0
libtpu: 0.0.40
codegen_flags: <defaults>
</compile_context>

<pallas_src>
import jax
import jax.numpy as jnp
from jax.experimental import pallas as pl
from jax.experimental.pallas import tpu as pltpu


def _round_up(x, m):
    return ((x + m - 1) // m) * m


# --------------------------------------------------------------------------
# Kernel 1: Bahdanau attention + single-step, single-layer GRU (small, gridless)
# --------------------------------------------------------------------------
def attn_gru_kernel(emb_ref, hid_ref, enc_ref, smask_ref,
                    wa_h_ref, wa_e_ref, ba_ref, v_ref,
                    w_e_g_ref, w_c_g_ref, w_h_g_ref, b_x_g_ref, b_h_g_ref,
                    hnew_ref, ctx_ref, attn_ref):
    emb = emb_ref[...]                        # [B, E]
    h = hid_ref[...]                          # [B, H]
    enc = enc_ref[...]                        # [B, S, 2H]   (S sublane-padded)
    B, S, D2 = enc.shape
    H = h.shape[-1]

    # -------- attention: scores = v . tanh(Wa_h h + Wa_e enc + ba) --------
    e_h = jnp.dot(h, wa_h_ref[...], preferred_element_type=jnp.float32)          # [B, H]
    e_enc = jnp.dot(enc.reshape(B * S, D2), wa_e_ref[...],
                    preferred_element_type=jnp.float32).reshape(B, S, H)          # [B, S, H]
    energy = jnp.tanh(e_enc + e_h[:, None, :] + ba_ref[...][None])                # [B, S, H]
    scores = jnp.sum(energy * v_ref[...][None], axis=-1) + smask_ref[...]         # [B, S]

    # softmax over (padded) source length; exact division for PyTorch parity.
    m = jnp.max(scores, axis=-1, keepdims=True)
    e = jnp.exp(scores - m)
    attn = e / jnp.sum(e, axis=-1, keepdims=True)                                 # [B, S]
    attn_ref[...] = attn

    # -------- context: VPU multiply + cross-sublane reduce (no M=1 matmuls) ----
    ctx = jnp.sum(attn[:, :, None] * enc, axis=1)                                 # [B, 2H]
    ctx_ref[...] = ctx

    # -------- single-step GRU, per-gate (r, z, n) weights: no lane slicing -----
    def gates(g):
        gx = (jnp.dot(emb, w_e_g_ref[g], preferred_element_type=jnp.float32)
              + jnp.dot(ctx, w_c_g_ref[g], preferred_element_type=jnp.float32)
              + b_x_g_ref[g])
        gh = jnp.dot(h, w_h_g_ref[g], preferred_element_type=jnp.float32) + b_h_g_ref[g]
        return gx, gh

    gx_r, gh_r = gates(0)
    gx_z, gh_z = gates(1)
    gx_n, gh_n = gates(2)
    r = jax.nn.sigmoid(gx_r + gh_r)
    z = jax.nn.sigmoid(gx_z + gh_z)
    n = jnp.tanh(gx_n + r * gh_n)
    hnew_ref[...] = (1.0 - z) * n + z * h                                         # [B, H]


# --------------------------------------------------------------------------
# Kernel 2: fc_out over vocab tiles (the only large HBM stream)
#   pred_tile = x @ W_tile + b, with x = [h_new ; emb ; ctx] (bf16) built once
#   in the wrapper and W pre-transposed / pre-padded / bf16 in prepare_params.
# --------------------------------------------------------------------------
def fc_kernel(x_ref, w_ref, b_ref, pred_ref):
    pred_ref[...] = (jnp.dot(x_ref[...], w_ref[...],
                             preferred_element_type=jnp.float32)
                     + b_ref[...])


# --------------------------------------------------------------------------
# One-time weight re-layout. Call ONCE before the decode loop, never per step.
# --------------------------------------------------------------------------
def prepare_params(params, *, tile_v=2048):
    E = params['embedding'].shape[1]
    H = params['wa_h'].shape[0]
    V = params['w_fc'].shape[0]
    d_in = 3 * H + E

    # vocab tiling: lane-dense tiles; even tile count (>=2 when V allows) so the
    # "parallel" grid axis splits cleanly across v7x's two TensorCores.
    v_round = _round_up(V, 128)
    tv = max(128, (min(tile_v, v_round) // 128) * 128)
    n_tiles = pl.cdiv(v_round, tv)
    if v_round >= 256:
        n_tiles = max(n_tiles, 2)
        if n_tiles % 2:
            n_tiles += 1
        tv = _round_up(pl.cdiv(v_round, n_tiles), 128)
    V_pad = tv * n_tiles

    # attention weights, pre-transposed to [in, out]
    wa_h_t = params['wa_h'].T                       # [H, H]
    wa_e_t = params['wa_e'].T                       # [2H, H]

    # GRU weights split per gate (PyTorch order r, z, n) and per input part
    w_ih, w_hh = params['w_ih'], params['w_hh']     # [3H, E+2H], [3H, H]
    b_ih, b_hh = params['b_ih'], params['b_hh']     # [1, 3H], [1, 3H]
    w_e_g = jnp.stack([w_ih[g * H:(g + 1) * H, :E].T for g in range(3)])   # [3, E, H]
    w_c_g = jnp.stack([w_ih[g * H:(g + 1) * H, E:].T for g in range(3)])   # [3, 2H, H]
    w_h_g = jnp.stack([w_hh[g * H:(g + 1) * H, :].T for g in range(3)])    # [3, H, H]
    b_x_g = jnp.stack([b_ih[:, g * H:(g + 1) * H] for g in range(3)])      # [3, 1, H]
    b_h_g = jnp.stack([b_hh[:, g * H:(g + 1) * H] for g in range(3)])      # [3, 1, H]

    # fc_out: single bf16 [d_in, V_pad] weight stream; row order = (h, emb, ctx),
    # matching cat(output, embedded, context) in the reference forward().
    w_fc_t = jnp.pad(params['w_fc'].T, ((0, 0), (0, V_pad - V))).astype(jnp.bfloat16)
    b_fc = jnp.pad(params['b_fc'], ((0, 0), (0, V_pad - V)))                # [1, V_pad] f32

    return {
        'embedding': params['embedding'],
        'wa_h_t': wa_h_t, 'wa_e_t': wa_e_t, 'ba': params['ba'], 'v': params['v'],
        'w_e_g': w_e_g, 'w_c_g': w_c_g, 'w_h_g': w_h_g,
        'b_x_g': b_x_g, 'b_h_g': b_h_g,
        'w_fc_t': w_fc_t, 'b_fc': b_fc,
        'E': E, 'H': H, 'V': V, 'd_in': d_in,
        'tile_v': tv, 'n_tiles': n_tiles, 'V_pad': V_pad,
    }


# --------------------------------------------------------------------------
# One decode step == Decoder.forward (eval mode, mask=None, n_layers=1).
#   `hidden` may be [B, H] or already sublane-padded [B_pad, H]; the returned new
#   hidden is padded [B_pad, H] so a decode loop feeds it straight back (slice to
#   [:B] only after the loop). Returns (pred [B, V], h_new_p [B_pad, H], attn [B, S]).
# --------------------------------------------------------------------------
def decoder_forward(input_ids, hidden, encoder_outputs, prep):
    H, E, V = prep['H'], prep['E'], prep['V']
    tile_v, n_tiles = prep['tile_v'], prep['n_tiles']
    V_pad, d_in = prep['V_pad'], prep['d_in']

    B = input_ids.shape[0]
    S = encoder_outputs.shape[1]
    B_pad = max(8, _round_up(B, 8))
    S_pad = _round_up(S, 8)

    # glue: embedding gather (+ eval-mode dropout == identity)
    emb = prep['embedding'][input_ids]                                     # [B, E]

    def pad_rows(x, n):
        if x.shape[0] == n:
            return x
        return jnp.pad(x, ((0, n - x.shape[0]),) + ((0, 0),) * (x.ndim - 1))

    emb_p = pad_rows(emb, B_pad)
    hid_p = pad_rows(hidden, B_pad)
    enc_p = jnp.pad(encoder_outputs, ((0, B_pad - B), (0, S_pad - S), (0, 0)))
    # additive mask only for the S padding we introduced (reference mask=None)
    smask = jnp.where(jnp.arange(S_pad) < S, 0.0, -1e30).astype(jnp.float32)[None, :]

    vmem = pl.BlockSpec(memory_space=pltpu.MemorySpace.VMEM)

    # ---- kernel 1: attention + GRU (everything small lives whole in VMEM) ----
    # TODO(synk): for large H (>=1024) or very long S on v7x (64 MiB VMEM), tile over S
    #             (online softmax) instead of keeping the whole [B_pad, S, 2H] resident.
    k1_bytes = 4 * (2 * B_pad * S_pad * 2 * H + B_pad * S_pad * H
                    + 3 * (E * H + 2 * H * H + H * H) + 3 * H * H
                    + 8 * B_pad * H)
    h_new_p, ctx_p, attn_p = pl.pallas_call(
        attn_gru_kernel,
        out_shape=(jax.ShapeDtypeStruct((B_pad, H), jnp.float32),
                   jax.ShapeDtypeStruct((B_pad, 2 * H), jnp.float32),
                   jax.ShapeDtypeStruct((B_pad, S_pad), jnp.float32)),
        in_specs=[vmem] * 13,
        out_specs=(vmem, vmem, vmem),
        input_output_aliases={1: 0},        # reuse hidden's HBM buffer for new hidden
        compiler_params=pltpu.CompilerParams(
            vmem_limit_bytes=int(min(64 * 2**20, max(4 * k1_bytes, 16 * 2**20)))),
    )(emb_p, hid_p, enc_p, smask,
      prep['wa_h_t'], prep['wa_e_t'], prep['ba'], prep['v'],
      prep['w_e_g'], prep['w_c_g'], prep['w_h_g'], prep['b_x_g'], prep['b_h_g'])

    # fc_out input: one [B_pad, d_in] bf16 slab, column order (h, emb, ctx)
    x_fc = jnp.concatenate([h_new_p, emb_p, ctx_p], axis=1).astype(jnp.bfloat16)

    # ---- kernel 2: fc_out, vocab-tiled, double-buffered bf16 weight stream ----
    fc_vmem = (2 * d_in * tile_v * 2        # double-buffered bf16 weight tile
               + B_pad * d_in * 2           # activation slab
               + 2 * tile_v * 4 * 2         # bias tiles
               + 2 * B_pad * tile_v * 4)    # double-buffered f32 output tile
    pred_p = pl.pallas_call(
        fc_kernel,
        out_shape=jax.ShapeDtypeStruct((B_pad, V_pad), jnp.float32),
        grid=(n_tiles,),
        in_specs=[
            pl.BlockSpec((B_pad, d_in), lambda j: (0, 0)),
            pl.BlockSpec((d_in, tile_v), lambda j: (0, j)),
            pl.BlockSpec((1, tile_v), lambda j: (0, j)),
        ],
        out_specs=pl.BlockSpec((B_pad, tile_v), lambda j: (0, j)),
        compiler_params=pltpu.CompilerParams(
            dimension_semantics=("parallel",),
            vmem_limit_bytes=int(min(64 * 2**20, max(2 * fc_vmem, 16 * 2**20)))),
        cost_estimate=pl.CostEstimate(
            flops=2 * B_pad * d_in * V_pad,
            transcendentals=0,
            bytes_accessed=(2 * d_in * V_pad + 2 * B_pad * d_in
                            + 4 * B_pad * V_pad + 4 * V_pad)),
    )(x_fc, prep['w_fc_t'], prep['b_fc'])

    return pred_p[:B, :V], h_new_p, attn_p[:B, :S]


def init_params(key, vocab_size, embedding_dim, hidden_size):
    H, E, V = hidden_size, embedding_dim, vocab_size
    ks = jax.random.split(key, 10)

    def rnd(k, shape, scale=0.1):
        return (scale * jax.random.normal(k, shape)).astype(jnp.float32)

    return {
        'embedding': rnd(ks[0], (V, E)),
        # attention: Linear(3H, H) split into hidden / encoder parts + v vector
        # (cat order assumed (hidden, encoder_outputs))
        'wa_h': rnd(ks[1], (H, H)),
        'wa_e': rnd(ks[2], (H, 2 * H)),
        'ba':   rnd(ks[3], (1, H)),
        'v':    rnd(ks[4], (1, H)),
        # GRU(E + 2H -> H), gate order (r, z, n) as in PyTorch
        'w_ih': rnd(ks[5], (3 * H, E + 2 * H)),
        'w_hh': rnd(ks[6], (3 * H, H)),
        'b_ih': rnd(ks[7], (1, 3 * H)),
        'b_hh': rnd(ks[8], (1, 3 * H)),
        # fc_out: Linear(3H + E, V), input column order (output, embedded, context)
        'w_fc': rnd(ks[9], (V, 3 * H + E)),
        'b_fc': jnp.zeros((1, V), jnp.float32),
    }


if __name__ == "__main__":
    V, E, H, S, B = 50, 32, 32, 8, 2

    key = jax.random.PRNGKey(0)
    kp, k1, k2, k3 = jax.random.split(key, 4)
    params = init_params(kp, V, E, H)
    prep = prepare_params(params)          # one-time weight re-layout

    input_ids = jax.random.randint(k1, (B,), 0, V)                       # [B]
    hidden = (0.1 * jax.random.normal(k2, (B, H))).astype(jnp.float32)   # [B, H]
    encoder_outputs = (0.1 * jax.random.normal(k3, (B, S, 2 * H))).astype(jnp.float32)

    pred, h_new_p, attn = decoder_forward(input_ids, hidden, encoder_outputs, prep)
    jax.block_until_ready((pred, h_new_p, attn))

    h_new = h_new_p[:B]                    # slice padded hidden after the (single-step) loop
    assert pred.shape == (B, V)
    assert h_new.shape == (B, H)
    assert attn.shape == (B, S)
    print("KERNEL_OK")
</pallas_src>

<mosaic_0001>
module attributes {stable_mosaic.version = 11 : i64} {
  func.func @attn_gru_kernel(%arg0: memref<8x32xf32, #tpu.memory_space<vmem>>, %arg1: memref<8x32xf32, #tpu.memory_space<vmem>>, %arg2: memref<8x8x64xf32, #tpu.memory_space<vmem>>, %arg3: memref<1x8xf32, #tpu.memory_space<vmem>>, %arg4: memref<32x32xf32, #tpu.memory_space<vmem>>, %arg5: memref<64x32xf32, #tpu.memory_space<vmem>>, %arg6: memref<1x32xf32, #tpu.memory_space<vmem>>, %arg7: memref<1x32xf32, #tpu.memory_space<vmem>>, %arg8: memref<3x32x32xf32, #tpu.memory_space<vmem>>, %arg9: memref<3x64x32xf32, #tpu.memory_space<vmem>>, %arg10: memref<3x32x32xf32, #tpu.memory_space<vmem>>, %arg11: memref<3x1x32xf32, #tpu.memory_space<vmem>>, %arg12: memref<3x1x32xf32, #tpu.memory_space<vmem>>, %arg13: memref<8x32xf32, #tpu.memory_space<vmem>>, %arg14: memref<8x64xf32, #tpu.memory_space<vmem>>, %arg15: memref<8x8xf32, #tpu.memory_space<vmem>>) attributes {dimension_semantics = [], scalar_prefetch = 0 : i64, scratch_operands = 0 : i64, tpu.core_type = #tpu.core_type<tc>} {
    %c0 = arith.constant 0 : index
    %c0_0 = arith.constant 0 : index
    %0 = vector.load %arg0[%c0, %c0_0] : memref<8x32xf32, #tpu.memory_space<vmem>>, vector<8x32xf32>
    %c0_1 = arith.constant 0 : index
    %c0_2 = arith.constant 0 : index
    %1 = vector.load %arg1[%c0_1, %c0_2] : memref<8x32xf32, #tpu.memory_space<vmem>>, vector<8x32xf32>
    %c0_3 = arith.constant 0 : index
    %c0_4 = arith.constant 0 : index
    %c0_5 = arith.constant 0 : index
    %2 = vector.load %arg2[%c0_3, %c0_4, %c0_5] : memref<8x8x64xf32, #tpu.memory_space<vmem>>, vector<8x8x64xf32>
    %c0_6 = arith.constant 0 : index
    %c0_7 = arith.constant 0 : index
    %3 = vector.load %arg4[%c0_6, %c0_7] : memref<32x32xf32, #tpu.memory_space<vmem>>, vector<32x32xf32>
    %cst = arith.constant dense<0.000000e+00> : vector<8x32xf32>
    %4 = tpu.matmul %1, %3, %cst {dimension_numbers = #tpu.dot_dimension_numbers<[1], [0], [0], [1], [0, 0, 1, 1], [], []>} : vector<8x32xf32>, vector<32x32xf32>, vector<8x32xf32> -> vector<8x32xf32>
    %5 = vector.shape_cast %2 : vector<8x8x64xf32> to vector<64x64xf32>
    %c0_8 = arith.constant 0 : index
    %c0_9 = arith.constant 0 : index
    %6 = vector.load %arg5[%c0_8, %c0_9] : memref<64x32xf32, #tpu.memory_space<vmem>>, vector<64x32xf32>
    %cst_10 = arith.constant dense<0.000000e+00> : vector<64x32xf32>
    %7 = tpu.matmul %5, %6, %cst_10 {dimension_numbers = #tpu.dot_dimension_numbers<[1], [0], [0], [1], [0, 0, 1, 1], [], []>} : vector<64x64xf32>, vector<64x32xf32>, vector<64x32xf32> -> vector<64x32xf32>
    %8 = vector.shape_cast %7 : vector<64x32xf32> to vector<8x8x32xf32>
    %9 = vector.shape_cast %4 : vector<8x32xf32> to vector<8x1x32xf32>
    %10 = vector.broadcast %9 : vector<8x1x32xf32> to vector<8x8x32xf32>
    %11 = arith.addf %8, %10 : vector<8x8x32xf32>
    %c0_11 = arith.constant 0 : index
    %c0_12 = arith.constant 0 : index
    %12 = vector.load %arg6[%c0_11, %c0_12] : memref<1x32xf32, #tpu.memory_space<vmem>>, vector<1x32xf32>
    %13 = vector.shape_cast %12 : vector<1x32xf32> to vector<1x1x32xf32>
    %14 = vector.broadcast %13 : vector<1x1x32xf32> to vector<8x8x32xf32>
    %15 = arith.addf %11, %14 : vector<8x8x32xf32>
    %16 = math.tanh %15 : vector<8x8x32xf32>
    %c0_13 = arith.constant 0 : index
    %c0_14 = arith.constant 0 : index
    %17 = vector.load %arg7[%c0_13, %c0_14] : memref<1x32xf32, #tpu.memory_space<vmem>>, vector<1x32xf32>
    %18 = vector.shape_cast %17 : vector<1x32xf32> to vector<1x1x32xf32>
    %19 = vector.broadcast %18 : vector<1x1x32xf32> to vector<8x8x32xf32>
    %20 = arith.mulf %16, %19 : vector<8x8x32xf32>
    %cst_15 = arith.constant dense<0.000000e+00> : vector<8x8xf32>
    %21 = vector.multi_reduction <add>, %20, %cst_15 [2] : vector<8x8x32xf32> to vector<8x8xf32>
    %c0_16 = arith.constant 0 : index
    %c0_17 = arith.constant 0 : index
    %22 = vector.load %arg3[%c0_16, %c0_17] : memref<1x8xf32, #tpu.memory_space<vmem>>, vector<1x8xf32>
    %23 = vector.broadcast %22 : vector<1x8xf32> to vector<8x8xf32>
    %24 = arith.addf %21, %23 : vector<8x8xf32>
    %cst_18 = arith.constant dense<0xFF800000> : vector<8xf32>
    %25 = vector.multi_reduction <maximumf>, %24, %cst_18 [1] : vector<8x8xf32> to vector<8xf32>
    %26 = vector.shape_cast %25 : vector<8xf32> to vector<8x1xf32>
    %27 = vector.broadcast %26 : vector<8x1xf32> to vector<8x8xf32>
    %28 = arith.subf %24, %27 : vector<8x8xf32>
    %29 = math.exp %28 : vector<8x8xf32>
    %cst_19 = arith.constant dense<0.000000e+00> : vector<8xf32>
    %30 = vector.multi_reduction <add>, %29, %cst_19 [1] : vector<8x8xf32> to vector<8xf32>
    %31 = vector.shape_cast %30 : vector<8xf32> to vector<8x1xf32>
    %32 = vector.broadcast %31 : vector<8x1xf32> to vector<8x8xf32>
    %33 = arith.divf %29, %32 : vector<8x8xf32>
    %c0_20 = arith.constant 0 : index
    %c0_21 = arith.constant 0 : index
    %34 = vector.load %arg15[%c0_20, %c0_21] : memref<8x8xf32, #tpu.memory_space<vmem>>, vector<8x8xf32>
    tpu.vector_store %arg15[%c0_20, %c0_21], %33 {strides = array<i32>} : memref<8x8xf32, #tpu.memory_space<vmem>>, vector<8x8xf32>,
    %35 = vector.shape_cast %33 : vector<8x8xf32> to vector<8x8x1xf32>
    %36 = vector.broadcast %35 : vector<8x8x1xf32> to vector<8x8x64xf32>
    %37 = arith.mulf %36, %2 : vector<8x8x64xf32>
    %cst_22 = arith.constant dense<0.000000e+00> : vector<8x64xf32>
    %38 = vector.multi_reduction <add>, %37, %cst_22 [1] : vector<8x8x64xf32> to vector<8x64xf32>
    %c0_23 = arith.constant 0 : index
    %c0_24 = arith.constant 0 : index
    %39 = vector.load %arg14[%c0_23, %c0_24] : memref<8x64xf32, #tpu.memory_space<vmem>>, vector<8x64xf32>
    tpu.vector_store %arg14[%c0_23, %c0_24], %38 {strides = array<i32>} : memref<8x64xf32, #tpu.memory_space<vmem>>, vector<8x64xf32>,
    %c0_25 = arith.constant 0 : index
    %c0_26 = arith.constant 0 : index
    %c0_27 = arith.constant 0 : index
    %40 = vector.load %arg8[%c0_25, %c0_26, %c0_27] : memref<3x32x32xf32, #tpu.memory_space<vmem>>, vector<1x32x32xf32>
    %41 = vector.shape_cast %40 : vector<1x32x32xf32> to vector<32x32xf32>
    %cst_28 = arith.constant dense<0.000000e+00> : vector<8x32xf32>
    %42 = tpu.matmul %0, %41, %cst_28 {dimension_numbers = #tpu.dot_dimension_numbers<[1], [0], [0], [1], [0, 0, 1, 1], [], []>} : vector<8x32xf32>, vector<32x32xf32>, vector<8x32xf32> -> vector<8x32xf32>
    %c0_29 = arith.constant 0 : index
    %c0_30 = arith.constant 0 : index
    %c0_31 = arith.constant 0 : index
    %43 = vector.load %arg9[%c0_29, %c0_30, %c0_31] : memref<3x64x32xf32, #tpu.memory_space<vmem>>, vector<1x64x32xf32>
    %44 = vector.shape_cast %43 : vector<1x64x32xf32> to vector<64x32xf32>
    %cst_32 = arith.constant dense<0.000000e+00> : vector<8x32xf32>
    %45 = tpu.matmul %38, %44, %cst_32 {dimension_numbers = #tpu.dot_dimension_numbers<[1], [0], [0], [1], [0, 0, 1, 1], [], []>} : vector<8x64xf32>, vector<64x32xf32>, vector<8x32xf32> -> vector<8x32xf32>
    %46 = arith.addf %42, %45 : vector<8x32xf32>
    %c0_33 = arith.constant 0 : index
    %c0_34 = arith.constant 0 : index
    %c0_35 = arith.constant 0 : index
    %47 = vector.load %arg11[%c0_33, %c0_34, %c0_35] : memref<3x1x32xf32, #tpu.memory_space<vmem>>, vector<1x1x32xf32>
    %48 = vector.shape_cast %47 : vector<1x1x32xf32> to vector<1x32xf32>
    %49 = vector.broadcast %48 : vector<1x32xf32> to vector<8x32xf32>
    %50 = arith.addf %46, %49 : vector<8x32xf32>
    %c0_36 = arith.constant 0 : index
    %c0_37 = arith.constant 0 : index
    %c0_38 = arith.constant 0 : index
    %51 = vector.load %arg10[%c0_36, %c0_37, %c0_38] : memref<3x32x32xf32, #tpu.memory_space<vmem>>, vector<1x32x32xf32>
    %52 = vector.shape_cast %51 : vector<1x32x32xf32> to vector<32x32xf32>
    %cst_39 = arith.constant dense<0.000000e+00> : vector<8x32xf32>
    %53 = tpu.matmul %1, %52, %cst_39 {dimension_numbers = #tpu.dot_dimension_numbers<[1], [0], [0], [1], [0, 0, 1, 1], [], []>} : vector<8x32xf32>, vector<32x32xf32>, vector<8x32xf32> -> vector<8x32xf32>
    %c0_40 = arith.constant 0 : index
    %c0_41 = arith.constant 0 : index
    %c0_42 = arith.constant 0 : index
    %54 = vector.load %arg12[%c0_40, %c0_41, %c0_42] : memref<3x1x32xf32, #tpu.memory_space<vmem>>, vector<1x1x32xf32>
    %55 = vector.shape_cast %54 : vector<1x1x32xf32> to vector<1x32xf32>
    %56 = vector.broadcast %55 : vector<1x32xf32> to vector<8x32xf32>
    %57 = arith.addf %53, %56 : vector<8x32xf32>
    %c1 = arith.constant 1 : index
    %c0_43 = arith.constant 0 : index
    %c0_44 = arith.constant 0 : index
    %58 = vector.load %arg8[%c1, %c0_43, %c0_44] : memref<3x32x32xf32, #tpu.memory_space<vmem>>, vector<1x32x32xf32>
    %59 = vector.shape_cast %58 : vector<1x32x32xf32> to vector<32x32xf32>
    %cst_45 = arith.constant dense<0.000000e+00> : vector<8x32xf32>
    %60 = tpu.matmul %0, %59, %cst_45 {dimension_numbers = #tpu.dot_dimension_numbers<[1], [0], [0], [1], [0, 0, 1, 1], [], []>} : vector<8x32xf32>, vector<32x32xf32>, vector<8x32xf32> -> vector<8x32xf32>
    %c1_46 = arith.constant 1 : index
    %c0_47 = arith.constant 0 : index
    %c0_48 = arith.constant 0 : index
    %61 = vector.load %arg9[%c1_46, %c0_47, %c0_48] : memref<3x64x32xf32, #tpu.memory_space<vmem>>, vector<1x64x32xf32>
    %62 = vector.shape_cast %61 : vector<1x64x32xf32> to vector<64x32xf32>
    %cst_49 = arith.constant dense<0.000000e+00> : vector<8x32xf32>
    %63 = tpu.matmul %38, %62, %cst_49 {dimension_numbers = #tpu.dot_dimension_numbers<[1], [0], [0], [1], [0, 0, 1, 1], [], []>} : vector<8x64xf32>, vector<64x32xf32>, vector<8x32xf32> -> vector<8x32xf32>
    %64 = arith.addf %60, %63 : vector<8x32xf32>
    %c1_50 = arith.constant 1 : index
    %c0_51 = arith.constant 0 : index
    %c0_52 = arith.constant 0 : index
    %65 = vector.load %arg11[%c1_50, %c0_51, %c0_52] : memref<3x1x32xf32, #tpu.memory_space<vmem>>, vector<1x1x32xf32>
    %66 = vector.shape_cast %65 : vector<1x1x32xf32> to vector<1x32xf32>
    %67 = vector.broadcast %66 : vector<1x32xf32> to vector<8x32xf32>
    %68 = arith.addf %64, %67 : vector<8x32xf32>
    %c1_53 = arith.constant 1 : index
    %c0_54 = arith.constant 0 : index
    %c0_55 = arith.constant 0 : index
    %69 = vector.load %arg10[%c1_53, %c0_54, %c0_55] : memref<3x32x32xf32, #tpu.memory_space<vmem>>, vector<1x32x32xf32>
    %70 = vector.shape_cast %69 : vector<1x32x32xf32> to vector<32x32xf32>
    %cst_56 = arith.constant dense<0.000000e+00> : vector<8x32xf32>
    %71 = tpu.matmul %1, %70, %cst_56 {dimension_numbers = #tpu.dot_dimension_numbers<[1], [0], [0], [1], [0, 0, 1, 1], [], []>} : vector<8x32xf32>, vector<32x32xf32>, vector<8x32xf32> -> vector<8x32xf32>
    %c1_57 = arith.constant 1 : index
    %c0_58 = arith.constant 0 : index
    %c0_59 = arith.constant 0 : index
    %72 = vector.load %arg12[%c1_57, %c0_58, %c0_59] : memref<3x1x32xf32, #tpu.memory_space<vmem>>, vector<1x1x32xf32>
    %73 = vector.shape_cast %72 : vector<1x1x32xf32> to vector<1x32xf32>
    %74 = vector.broadcast %73 : vector<1x32xf32> to vector<8x32xf32>
    %75 = arith.addf %71, %74 : vector<8x32xf32>
    %c2 = arith.constant 2 : index
    %c0_60 = arith.constant 0 : index
    %c0_61 = arith.constant 0 : index
    %76 = vector.load %arg8[%c2, %c0_60, %c0_61] : memref<3x32x32xf32, #tpu.memory_space<vmem>>, vector<1x32x32xf32>
    %77 = vector.shape_cast %76 : vector<1x32x32xf32> to vector<32x32xf32>
    %cst_62 = arith.constant dense<0.000000e+00> : vector<8x32xf32>
    %78 = tpu.matmul %0, %77, %cst_62 {dimension_numbers = #tpu.dot_dimension_numbers<[1], [0], [0], [1], [0, 0, 1, 1], [], []>} : vector<8x32xf32>, vector<32x32xf32>, vector<8x32xf32> -> vector<8x32xf32>
    %c2_63 = arith.constant 2 : index
    %c0_64 = arith.constant 0 : index
    %c0_65 = arith.constant 0 : index
    %79 = vector.load %arg9[%c2_63, %c0_64, %c0_65] : memref<3x64x32xf32, #tpu.memory_space<vmem>>, vector<1x64x32xf32>
    %80 = vector.shape_cast %79 : vector<1x64x32xf32> to vector<64x32xf32>
    %cst_66 = arith.constant dense<0.000000e+00> : vector<8x32xf32>
    %81 = tpu.matmul %38, %80, %cst_66 {dimension_numbers = #tpu.dot_dimension_numbers<[1], [0], [0], [1], [0, 0, 1, 1], [], []>} : vector<8x64xf32>, vector<64x32xf32>, vector<8x32xf32> -> vector<8x32xf32>
    %82 = arith.addf %78, %81 : vector<8x32xf32>
    %c2_67 = arith.constant 2 : index
    %c0_68 = arith.constant 0 : index
    %c0_69 = arith.constant 0 : index
    %83 = vector.load %arg11[%c2_67, %c0_68, %c0_69] : memref<3x1x32xf32, #tpu.memory_space<vmem>>, vector<1x1x32xf32>
    %84 = vector.shape_cast %83 : vector<1x1x32xf32> to vector<1x32xf32>
    %85 = vector.broadcast %84 : vector<1x32xf32> to vector<8x32xf32>
    %86 = arith.addf %82, %85 : vector<8x32xf32>
    %c2_70 = arith.constant 2 : index
    %c0_71 = arith.constant 0 : index
    %c0_72 = arith.constant 0 : index
    %87 = vector.load %arg10[%c2_70, %c0_71, %c0_72] : memref<3x32x32xf32, #tpu.memory_space<vmem>>, vector<1x32x32xf32>
    %88 = vector.shape_cast %87 : vector<1x32x32xf32> to vector<32x32xf32>
    %cst_73 = arith.constant dense<0.000000e+00> : vector<8x32xf32>
    %89 = tpu.matmul %1, %88, %cst_73 {dimension_numbers = #tpu.dot_dimension_numbers<[1], [0], [0], [1], [0, 0, 1, 1], [], []>} : vector<8x32xf32>, vector<32x32xf32>, vector<8x32xf32> -> vector<8x32xf32>
    %c2_74 = arith.constant 2 : index
    %c0_75 = arith.constant 0 : index
    %c0_76 = arith.constant 0 : index
    %90 = vector.load %arg12[%c2_74, %c0_75, %c0_76] : memref<3x1x32xf32, #tpu.memory_space<vmem>>, vector<1x1x32xf32>
    %91 = vector.shape_cast %90 : vector<1x1x32xf32> to vector<1x32xf32>
    %92 = vector.broadcast %91 : vector<1x32xf32> to vector<8x32xf32>
    %93 = arith.addf %89, %92 : vector<8x32xf32>
    %94 = arith.addf %50, %57 : vector<8x32xf32>
    %95 = arith.negf %94 : vector<8x32xf32>
    %96 = math.exp %95 : vector<8x32xf32>
    %cst_77 = arith.constant 1.000000e+00 : f32
    %97 = vector.broadcast %cst_77 : f32 to vector<8x32xf32>
    %98 = arith.addf %97, %96 : vector<8x32xf32>
    %99 = arith.divf %97, %98 : vector<8x32xf32>
    %100 = arith.addf %68, %75 : vector<8x32xf32>
    %101 = arith.negf %100 : vector<8x32xf32>
    %102 = math.exp %101 : vector<8x32xf32>
    %cst_78 = arith.constant 1.000000e+00 : f32
    %103 = vector.broadcast %cst_78 : f32 to vector<8x32xf32>
    %104 = arith.addf %103, %102 : vector<8x32xf32>
    %105 = arith.divf %103, %104 : vector<8x32xf32>
    %106 = arith.mulf %99, %93 : vector<8x32xf32>
    %107 = arith.addf %86, %106 : vector<8x32xf32>
    %108 = math.tanh %107 : vector<8x32xf32>
    %cst_79 = arith.constant 1.000000e+00 : f32
    %109 = vector.broadcast %cst_79 : f32 to vector<8x32xf32>
    %110 = arith.subf %109, %105 : vector<8x32xf32>
    %111 = arith.mulf %110, %108 : vector<8x32xf32>
    %112 = arith.mulf %105, %1 : vector<8x32xf32>
    %113 = arith.addf %111, %112 : vector<8x32xf32>
    %c0_80 = arith.constant 0 : index
    %c0_81 = arith.constant 0 : index
    %114 = vector.load %arg13[%c0_80, %c0_81] : memref<8x32xf32, #tpu.memory_space<vmem>>, vector<8x32xf32>
    tpu.vector_store %arg13[%c0_80, %c0_81], %113 {strides = array<i32>} : memref<8x32xf32, #tpu.memory_space<vmem>>, vector<8x32xf32>,
    return
  }
}

</mosaic_0001>

<bundles_post_ra>
// kernel: tpu_custom_call.1
= control target key start
LH: loop header
LB: loop body
LE: loop exit
PB: predicated region body
PF: predicated region fallthrough
CT: control target
= control target key end

     0   :  { %21 = vsyncpa [#allocation3], 0  ;;  %s1989_s0 = inlined_call_operand.vmem [shape: f32[8,32], index: 0, kind: input, shape index: {}]   ;;  %s1990_s1 = inlined_call_operand.hbm [shape: f32[8,32], index: 1, kind: input, shape index: {}, may-alias: {1,13}]   ;;  %s1991_s2 = inlined_call_operand.vmem [shape: f32[8,8,64], index: 2, kind: input, shape index: {}]   ;;  %s1992_s3 = inlined_call_operand.vmem [shape: f32[1,8], index: 3, kind: input, shape index: {}]   ;;  %s1993_s4 = inlined_call_operand.vmem [shape: f32[32,32], index: 4, kind: input, shape index: {}]   ;;  %s1994_s5 = inlined_call_operand.vmem [shape: f32[64,32], index: 5, kind: input, shape index: {}]   ;;  %s1995_s6 = inlined_call_operand.vmem [shape: f32[1,32], index: 6, kind: input, shape index: {}]   ;;  %s1996_s7 = inlined_call_operand.vmem [shape: f32[1,32], index: 7, kind: input, shape index: {}]   ;;  %s1997_s8 = inlined_call_operand.vmem [shape: f32[3,32,32], index: 8, kind: input, shape index: {}]   ;;  %s1998_s9 = inlined_call_operand.vmem [shape: f32[3,64,32], index: 9, kind: input, shape index: {}]   ;;  %s1999_s10 = inlined_call_operand.vmem [shape: f32[3,32,32], index: 10, kind: input, shape index: {}]   ;;  %s2000_s11 = inlined_call_operand.vmem [shape: f32[3,1,32], index: 11, kind: input, shape index: {}]   ;;  %s2001_s12 = inlined_call_operand.vmem [shape: f32[3,1,32], index: 12, kind: input, shape index: {}]   ;;  %s2002_s13 = inlined_call_operand.hbm [shape: f32[8,32], index: 13, kind: output, shape index: {0}, may-alias: {1,13}]   ;;  %s2003_s14 = inlined_call_operand.hbm [shape: f32[8,64], index: 14, kind: output, shape index: {1}]   ;;  %s2004_s15 = inlined_call_operand.hbm [shape: f32[8,8], index: 15, kind: output, shape index: {2}]  }
   0x1   :  { %22 = vsyncpa [#allocation4], 0 }
   0x2   :  { %23 = vsyncpa [#allocation7], 0  ;;  %s31_s20 = sshll.u32 %s1990_s1, 4  ;;  %s1327_s21 = smov [#allocation2]   ;;  %s32_s20 = int_to_ptr.hbm [resolvable:$true] %s31_s20 }
   0x3   :  { %s33_s22 = sshll.u32 %s1327_s21, 4  ;;  %s34_s22 = int_to_ptr.vmem [resolvable:$true] %s33_s22 }
   0x4   :  { %36 = dma.hbm_to_vmem [thread:$0]  %s32_s20, 128, %s34_s22, [#allocation3]  }
   0x5   :  { %1321 = dma.done.wait [#allocation3], 128  }
   0x6   :  { %1322 = vsyncadd [#allocation3], 4294967168  ;;  %v108_v0 = vld [vmem:[%s1994_s5 + $0x38] sm:$0xff]  ;;  %v107_v1 = vld [vmem:[%s1994_s5 + $0x30] sm:$0xff]  ;;  %vm77_vm0 = vcmask 261120   ;;  %vm109_vm1 = vcmask 523264   ;;  %v266_v16 = vlaneseq }
   0x7   :  { %142 = vmatpush.msra.mxu1 %v108_v0  ;;  %1131 = vmatpush.msra.mxu2 %v108_v0  ;;  %v76_v2 = vld [vmem:[%s1993_s4 + $0x18] sm:$0xff]  ;;  %v75_v3 = vld [vmem:[%s1993_s4 + $0x10] sm:$0xff]  ;;  %v106_v4 = vld [vmem:[%s1994_s5 + $0x28] sm:$0xff]  ;;  %vm323_vm2 = vcmask 1041409   ;;  %vm325_vm3 = vcmask 1042434   ;;  %vm327_vm4 = vcmask 1043459  }
   0x8   :  { %1132 = vmatpush.msra.mxu3 %v108_v0  ;;  %93 = vmatpush.msra.mxu0 %v76_v2  ;;  %v74_v5 = vld [vmem:[%s1993_s4 + $0x8] sm:$0xff]  ;;  %v105_v6 = vld [vmem:[%s1994_s5 + $0x20] sm:$0xff]  ;;  %v104_v8 = vld [vmem:[%s1994_s5 + $0x18] sm:$0xff]  ;;  %v267_v17 = vshrl.u32 %v266_v16, 7  ;;  %vm2009_vm5 = vcmask 1044484   ;;  %vm2008_vm6 = vcmask 1045509  }
   0x9   :  { %143 = vmatpush.msra.mxu1 %v107_v1  ;;  %1133 = vmatpush.msra.mxu2 %v107_v1  ;;  %v73_v7 = vld [vmem:[%s1993_s4] sm:$0xff]  ;;  %v103_v10 = vld [vmem:[%s1994_s5 + $0x10] sm:$0xff]  ;;  %v102_v11 = vld [vmem:[%s1994_s5 + $0x8] sm:$0xff]  ;;  %vm2007_vm7 = vcmask 1046534   ;;  %vm2006_vm8 = vcmask 1047559   ;;  %vm2005_vm9 = vcmask 64512  }
   0xa   :  { %1134 = vmatpush.msra.mxu3 %v107_v1  ;;  %94 = vmatpush.msra.mxu0 %v75_v3  ;;  %v1442_v9 = vld [vmem:[#allocation2] sm:$0xff]  ;;  %v1463_v14 = vld [vmem:[%s1991_s2 + $0x28] sm:$0xff]  ;;  %v1468_v15 = vld [vmem:[%s1991_s2 + $0x38] sm:$0xff]  ;;  %s1045_s25 = sshll.u32 %s2003_s14, 4  ;;  %s1329_s26 = smov [#allocation6]   ;;  %s1046_s25 = int_to_ptr.hbm [resolvable:$true] %s1045_s25 }
   0xb   :  { %144 = vmatpush.msra.mxu1 %v106_v4  ;;  %1135 = vmatpush.msra.mxu2 %v106_v4  ;;  %v101_v12 = vld [vmem:[%s1994_s5] sm:$0xff]  ;;  %v1480_v18 = vld [vmem:[%s1991_s2 + $0x8] sm:$0xff]  ;;  %v71_v19 = vld [vmem:[%s1991_s2 + $0x30] sm:$0xff]  ;;  %s1043_s4 = sshll.u32 %s1329_s26, 4  ;;  %s1056_s1 = sshll.u32 %s2004_s15, 4  ;;  %s1044_s4 = int_to_ptr.vmem [resolvable:$true] %s1043_s4  ;;  %s1057_s1 = int_to_ptr.hbm [resolvable:$true] %s1056_s1 }
   0xc   :  { %1136 = vmatpush.msra.mxu3 %v106_v4  ;;  %95 = vmatpush.msra.mxu0 %v74_v5  ;;  %v1458_v13 = vld [vmem:[%s1991_s2] sm:$0xff]  ;;  %v1494_v21 = vld [vmem:[%s1991_s2 + $0x10] sm:$0xff]  ;;  %v1501_v22 = vld [vmem:[%s1991_s2 + $0x18] sm:$0xff]  ;;  %s1034_s21 = sshll.u32 %s2002_s13, 4  ;;  %s1035_s21 = int_to_ptr.hbm [resolvable:$true] %s1034_s21 }
   0xd   :  { %145 = vmatpush.msra.mxu1 %v105_v6  ;;  %1137 = vmatpush.msra.mxu2 %v105_v6  ;;  %v1156_v20 = vld [vmem:[%s1992_s3] ss:$0 sm:$0xff] }
   0xe   :  { %1138 = vmatpush.msra.mxu3 %v105_v6  ;;  %96 = vmatpush.msra.mxu0 %v73_v7  ;;  %v1508_v23 = vld [vmem:[%s1991_s2 + $0x20] sm:$0xff] }
   0xf   :  { %146 = vmatpush.msra.mxu1 %v104_v8  ;;  %1139 = vmatpush.msra.mxu2 %v104_v8  ;;  %v1518_v26 = vld [vmem:[%s1995_s6] ss:$0 sm:$0xff] }
  0x10   :  { %1140 = vmatpush.msra.mxu3 %v104_v8  ;;  %1075 = vmatmul.msk.f32.vlgmr.msra.gmra.mxu0 %vm77_vm0, %v1442_v9  ;;  %v1526_v38 = vld [vmem:[%s1996_s7] ss:$0 sm:$0xff] }
  0x11   :  { %147 = vmatpush.msra.mxu1 %v103_v10  ;;  %1141 = vmatpush.msra.mxu2 %v103_v10 }
  0x12   :  { %1142 = vmatpush.msra.mxu3 %v103_v10  ;;  %1152 = vset.pattern.permute.xlu1 %v267_v17 }
  0x13   :  { %148 = vmatpush.msra.mxu1 %v102_v11  ;;  %1143 = vmatpush.msra.mxu2 %v102_v11 }
  0x14   :  { %1144 = vmatpush.msra.mxu3 %v102_v11 }
  0x15   :  { %149 = vmatpush.msra.mxu1 %v101_v12  ;;  %1145 = vmatpush.msra.mxu2 %v101_v12 }
  0x16   :  { %1146 = vmatpush.msra.mxu3 %v101_v12  ;;  %1076 = vmatmul.msk.f32.vlgmr.msra.gmra.mxu1 %vm109_vm1, %v1458_v13 }
  0x17   :  { %1081 = vmatmul.msk.f32.vlgmr.msra.gmra.mxu2 %vm109_vm1, %v1463_v14  ;;  %1083 = vmatmul.msk.f32.vlgmr.msra.gmra.mxu3 %vm109_vm1, %v1468_v15 }
  0x1a   :  { %270 = vperm.xlu1 %1152, %v1156_v20  }
  0x1e   :  { %1077 = vmatmul.msk.f32.gmra.mxu1 %vm109_vm1, %v1480_v18 }
  0x1f   :  { %1082 = vmatmul.msk.f32.gmra.mxu2 %vm109_vm1, %v71_v19 }
  0x26   :  { %1078 = vmatmul.msk.f32.gmra.mxu1 %vm109_vm1, %v1494_v21 }
  0x2e   :  { %1079 = vmatmul.msk.f32.gmra.mxu1 %vm109_vm1, %v1501_v22 }
  0x36   :  { %1080 = vmatmul.msk.f32.gmra.mxu1 %vm109_vm1, %v1508_v23 }
  0x8d   :  { %v1512_v24 = vpop.f32.mrf.mxu0 }
  0x8e   :  { %v183_v25 = vperm.slane %v1512_v24, 0  ;;  %v180_v29 = vrot.slane %v1512_v24, 5  ;;  %v182_v31 = vrot.slane %v1512_v24, 7  ;;  %v181_v41 = vrot.slane %v1512_v24, 6 }
  0x8f   :  { %v176_v43 = vrot.slane %v1512_v24, 1  ;;  %v177_v44 = vrot.slane %v1512_v24, 2  ;;  %v178_v60 = vrot.slane %v1512_v24, 3  ;;  %v179_v8 = vrot.slane %v1512_v24, 4 }
  0x90   :  { %v188_v32 = vperm.slane %v180_v29, 0  ;;  %v190_v35 = vperm.slane %v182_v31, 0  ;;  %v189_v47 = vperm.slane %v181_v41, 0 }
  0x91   :  { %v184_v49 = vperm.slane %v176_v43, 0  ;;  %v185_v51 = vperm.slane %v177_v44, 0  ;;  %v186_v0 = vperm.slane %v178_v60, 0  ;;  %v187_v20 = vperm.slane %v179_v8, 0 }
  0x93   :  { %v151_v27 = vpop.f32.mrf.mxu1 }
  0x94   :  { %v199_v28 = vadd.f32 %v183_v25, %v151_v27 }
  0x96   :  { %v211_v30 = vadd.f32 %v1518_v26, %v199_v28 }
  0x98   :  { %1165 = vtanh.f32 %v211_v30 }
  0x9a   :  { %v166_v33 = vpop.f32.mrf.mxu2  ;;  %v172_v34 = vpop.f32.mrf.mxu3 }
  0x9b   :  { %v204_v36 = vadd.f32 %v188_v32, %v166_v33  ;;  %v154_v37 = vpop.f32.mrf.mxu1  ;;  %v206_v39 = vadd.f32 %v190_v35, %v172_v34 }
  0x9c   :  { %v200_v54 = vadd.f32 %v184_v49, %v154_v37 }
  0x9d   :  { %v216_v40 = vadd.f32 %v1518_v26, %v204_v36  ;;  %v218_v46 = vadd.f32 %v1518_v26, %v206_v39  ;;  %v1328_v36 = vmov 0  }
  0x9e   :  { %v1166_v42 = vpop.eup %1165  ;;  %v212_v61 = vadd.f32 %v1518_v26, %v200_v54  ;;  %1153 = vset.pattern.permute.xlu2 %v1328_v36  ;;  %1155 = vset.pattern.permute.xlu1 %v1328_v36 }
  0x9f   :  { %1167 = vtanh.f32 %v216_v40  ;;  %v231_v45 = vmul.f32 %v1166_v42, %v1526_v38  ;;  %1154 = vset.pattern.permute.xlu0 %v1328_v36 }
  0xa0   :  { %1169 = vtanh.f32 %v218_v46 }
  0xa1   :  { %v239_v48 = vsel %vm77_vm0, %v231_v45, 0.0 }
  0xa2   :  { %v169_v50 = vpop.f32.mrf.mxu2  ;;  %240 = vadd.xlane.f32.xlu0 %v239_v48 }
  0xa3   :  { %v205_v52 = vadd.f32 %v189_v47, %v169_v50  ;;  %v157_v53 = vpop.f32.mrf.mxu1 }
  0xa4   :  { %v201_v55 = vadd.f32 %v185_v51, %v157_v53 }
  0xa5   :  { %v1168_v56 = vpop.eup %1167  ;;  %v217_v57 = vadd.f32 %v1518_v26, %v205_v52 }
  0xa6   :  { %v213_v58 = vadd.f32 %v1518_v26, %v201_v55  ;;  %v236_v59 = vmul.f32 %v1168_v56, %v1526_v38  ;;  %v1170_v63 = vpop.eup %1169 }
  0xa7   :  { %1171 = vtanh.f32 %v217_v57  ;;  %v238_v4 = vmul.f32 %v1170_v63, %v1526_v38  ;;  %v1569_v57 = vand.u32 127, %v266_v16 }
  0xa8   :  { %1173 = vtanh.f32 %v213_v58  ;;  %v254_v62 = vsel %vm77_vm0, %v236_v59, 0.0 }
  0xa9   :  { %1175 = vtanh.f32 %v212_v61  ;;  %v260_v12 = vsel %vm77_vm0, %v238_v4, 0.0 }
  0xaa   :  { %255 = vadd.xlane.f32.xlu0 %v254_v62 }
  0xab   :  { %v160_v1 = vpop.f32.mrf.mxu1 }
  0xac   :  { %v202_v2 = vadd.f32 %v186_v0, %v160_v1 }
  0xad   :  { %v1172_v3 = vpop.eup %1171 }
  0xae   :  { %v1174_v5 = vpop.eup %1173  ;;  %v214_v6 = vadd.f32 %v1518_v26, %v202_v2  ;;  %v237_v7 = vmul.f32 %v1172_v3, %v1526_v38 }
  0xaf   :  { %v233_v10 = vmul.f32 %v1174_v5, %v1526_v38  ;;  %v1176_v19 = vpop.eup %1175 }
  0xb0   :  { %1177 = vtanh.f32 %v214_v6  ;;  %v257_v11 = vsel %vm77_vm0, %v237_v7, 0.0  ;;  %v232_v28 = vmul.f32 %v1176_v19, %v1526_v38 }
  0xb1   :  { %258 = vadd.xlane.f32.xlu2 %v257_v11  ;;  %v245_v17 = vsel %vm77_vm0, %v233_v10, 0.0 }
  0xb2   :  { %261 = vadd.xlane.f32.xlu0 %v260_v12  ;;  %246 = vadd.xlane.f32.xlu1 %v245_v17  ;;  %v242_v32 = vsel %vm77_vm0, %v232_v28, 0.0 }
  0xb3   :  { %v163_v25 = vpop.f32.mrf.mxu1 }
  0xb4   :  { %v203_v27 = vadd.f32 %v187_v20, %v163_v25 }
  0xb6   :  { %v1178_v29 = vpop.eup %1177  ;;  %v215_v24 = vadd.f32 %v1518_v26, %v203_v27  ;;  %v271_v26 = vpop.permute.xlu1 %270 }
  0xb7   :  { %v234_v30 = vmul.f32 %v1178_v29, %v1526_v38 }
  0xb8   :  { %1179 = vtanh.f32 %v215_v24 }
  0xb9   :  { %v248_v31 = vsel %vm77_vm0, %v234_v30, 0.0 }
  0xba   :  { %249 = vadd.xlane.f32.xlu2 %v248_v31  ;;  %243 = vadd.xlane.f32.xlu0 %v242_v32 }
  0xbe   :  { %v1180_v33 = vpop.eup %1179 }
  0xbf   :  { %v235_v34 = vmul.f32 %v1180_v33, %v1526_v38 }
  0xc1   :  { %v251_v35 = vsel %vm77_vm0, %v235_v34, 0.0 }
  0xc2   :  { %252 = vadd.xlane.f32.xlu2 %v251_v35 }
 0x115   :  { %v241_v37 = vpop.xlane.xlu0 %240 }
 0x116   :  { %v273_v39 = vadd.f32 %v271_v26, %v241_v37 }
 0x118   :  { %290 = vperm.xlu2 %1153, %v273_v39  }
 0x11d   :  { %v256_v40 = vpop.xlane.xlu0 %255 }
 0x11e   :  { %v1556_v41 = vadd.f32 %v271_v26, %v256_v40 }
 0x120   :  { %305 = vperm.xlu1 %1155, %v1556_v41  }
 0x124   :  { %v259_v42 = vpop.xlane.xlu2 %258 }
 0x125   :  { %v262_v43 = vpop.xlane.xlu0 %261  ;;  %v247_v44 = vpop.xlane.xlu1 %246  ;;  %v1565_v52 = vadd.f32 %v271_v26, %v259_v42 }
 0x126   :  { %v275_v38 = vadd.f32 %v271_v26, %v247_v44  ;;  %v1559_v50 = vadd.f32 %v271_v26, %v262_v43 }
 0x128   :  { %296 = vperm.xlu1 %1155, %v275_v38  }
 0x12d   :  { %v250_v45 = vpop.xlane.xlu2 %249  ;;  %v244_v46 = vpop.xlane.xlu0 %243 }
 0x12e   :  { %v276_v47 = vadd.f32 %v271_v26, %v250_v45  ;;  %v274_v48 = vadd.f32 %v271_v26, %v244_v46 }
 0x130   :  { %299 = vperm.xlu1 %1155, %v276_v47   ;;  %293 = vperm.xlu0 %1154, %v274_v48  }
 0x135   :  { %v253_v49 = vpop.xlane.xlu2 %252 }
 0x136   :  { %v1561_v51 = vadd.f32 %v271_v26, %v253_v49 }
 0x138   :  { %302 = vperm.xlu2 %1153, %v1561_v51   ;;  %311 = vperm.xlu1 %1155, %v1559_v50  }
 0x140   :  { %308 = vperm.xlu2 %1153, %v1565_v52  }
 0x172   :  { %v291_v54 = vpop.permute.xlu2 %290 }
 0x173   :  { %v315_v60 = vperm.slane %v291_v54, %v1569_v57 }
 0x192   :  { %v306_v53 = vpop.permute.xlu1 %305  ;;  %v303_v56 = vpop.permute.xlu2 %302 }
 0x193   :  { %v319_v1 = vperm.slane %v303_v56, %v1569_v57  ;;  %v320_v2 = vperm.slane %v306_v53, %v1569_v57 }
 0x19a   :  { %v297_v55 = vpop.permute.xlu1 %296  ;;  %v309_v3 = vpop.permute.xlu2 %308 }
 0x19b   :  { %v317_v62 = vperm.slane %v297_v55, %v1569_v57  ;;  %v321_v7 = vperm.slane %v309_v3, %v1569_v57 }
 0x1a2   :  { %v300_v58 = vpop.permute.xlu1 %299  ;;  %v294_v59 = vpop.permute.xlu0 %293 }
 0x1a3   :  { %v316_v61 = vperm.slane %v294_v59, %v1569_v57  ;;  %v318_v63 = vperm.slane %v300_v58, %v1569_v57 }
 0x1a5   :  { %v324_v0 = vsel %vm323_vm2, %v316_v61, %v315_v60 }
 0x1a6   :  { %v326_v16 = vsel %vm325_vm3, %v317_v62, %v324_v0 }
 0x1a7   :  { %v328_v4 = vsel %vm327_vm4, %v318_v63, %v326_v16 }
 0x1a8   :  { %v330_v5 = vsel %vm2009_vm5, %v319_v1, %v328_v4 }
 0x1a9   :  { %v332_v6 = vsel %vm2008_vm6, %v320_v2, %v330_v5 }
 0x1aa   :  { %v312_v8 = vpop.permute.xlu1 %311  ;;  %v334_v11 = vsel %vm2007_vm7, %v321_v7, %v332_v6 }
 0x1ab   :  { %v322_v10 = vperm.slane %v312_v8, %v1569_v57 }
 0x1ad   :  { %v336_v12 = vsel %vm2006_vm8, %v322_v10, %v334_v11 }
 0x1ae   :  { %v339_v17 = vsel %vm2005_vm9, %v336_v12, -inf }
 0x1af   :  { %340 = vmax.xlane.f32.xlu2 %v339_v17 }
 0x222   :  { %v341_v19 = vpop.xlane.xlu2 %340 }
 0x223   :  { %v344_v20 = vperm.slane %v341_v19, 1  ;;  %v343_v25 = vperm.slane %v341_v19, 0  ;;  %v346_v29 = vperm.slane %v341_v19, 3  ;;  %v345_v24 = vperm.slane %v341_v19, 2 }
 0x224   :  { %v348_v35 = vperm.slane %v341_v19, 5  ;;  %v347_v26 = vperm.slane %v341_v19, 4  ;;  %v350_v44 = vperm.slane %v341_v19, 7  ;;  %v349_v45 = vperm.slane %v341_v19, 6 }
 0x225   :  { %v360_v27 = vsub.f32 %v274_v48, %v344_v20  ;;  %v359_v28 = vsub.f32 %v273_v39, %v343_v25  ;;  %v362_v32 = vsub.f32 %v276_v47, %v346_v29  ;;  %v361_v33 = vsub.f32 %v275_v38, %v345_v24 }
 0x226   :  { %v364_v39 = vsub.f32 %v1556_v41, %v348_v35  ;;  %v363_v42 = vsub.f32 %v1561_v51, %v347_v26  ;;  %v366_v48 = vsub.f32 %v1559_v50, %v350_v44  ;;  %v365_v41 = vsub.f32 %v1565_v52, %v349_v45 }
 0x227   :  { %v369_v30 = vmul.f32 1.442695, %v360_v27  ;;  %v367_v31 = vmul.f32 1.442695, %v359_v28  ;;  %v373_v34 = vmul.f32 1.442695, %v362_v32 }
 0x228   :  { %v371_v36 = vmul.f32 1.442695, %v361_v33  ;;  %v377_v43 = vmul.f32 1.442695, %v364_v39  ;;  %v375_v38 = vmul.f32 1.442695, %v363_v42 }
 0x229   :  { %1181 = vpow2.f32 %v369_v30  ;;  %v381_v49 = vmul.f32 1.442695, %v366_v48  ;;  %v379_v51 = vmul.f32 1.442695, %v365_v41 }
 0x22a   :  { %1183 = vpow2.f32 %v367_v31 }
 0x22b   :  { %1185 = vpow2.f32 %v373_v34 }
 0x22c   :  { %1187 = vpow2.f32 %v371_v36 }
 0x22d   :  { %1189 = vpow2.f32 %v377_v43 }
 0x22e   :  { %1191 = vpow2.f32 %v375_v38 }
 0x22f   :  { %v1587_v37 = vpop.eup %1181  ;;  %1193 = vpow2.f32 %v381_v49 }
 0x230   :  { %v1589_v40 = vpop.eup %1183  ;;  %395 = vperm.xlu0 %1154, %v1587_v37   ;;  %1195 = vpow2.f32 %v379_v51 }
 0x231   :  { %392 = vperm.xlu1 %1155, %v1589_v40   ;;  %v1595_v46 = vpop.eup %1185 }
 0x232   :  { %v1597_v47 = vpop.eup %1187 }
 0x233   :  { %v1603_v53 = vpop.eup %1189 }
 0x234   :  { %v1605_v54 = vpop.eup %1191 }
 0x235   :  { %v1609_v55 = vpop.eup %1193 }
 0x236   :  { %v1611_v56 = vpop.eup %1195 }
 0x238   :  { %401 = vperm.xlu0 %1154, %v1595_v46  }
 0x239   :  { %398 = vperm.xlu1 %1155, %v1597_v47  }
 0x240   :  { %407 = vperm.xlu0 %1154, %v1603_v53  }
 0x241   :  { %404 = vperm.xlu1 %1155, %v1605_v54  }
 0x248   :  { %413 = vperm.xlu0 %1154, %v1609_v55  }
 0x249   :  { %410 = vperm.xlu1 %1155, %v1611_v56  }
 0x2a2   :  { %v396_v50 = vpop.permute.xlu0 %395 }
 0x2a3   :  { %v393_v52 = vpop.permute.xlu1 %392  ;;  %v416_v60 = vperm.slane %v396_v50, %v1569_v57 }
 0x2a4   :  { %v415_v61 = vperm.slane %v393_v52, %v1569_v57 }
 0x2a6   :  { %v423_v1 = vsel %vm323_vm2, %v416_v60, %v415_v61 }
 0x2aa   :  { %v402_v58 = vpop.permute.xlu0 %401 }
 0x2ab   :  { %v399_v59 = vpop.permute.xlu1 %398  ;;  %v418_v16 = vperm.slane %v402_v58, %v1569_v57 }
 0x2ac   :  { %v417_v62 = vperm.slane %v399_v59, %v1569_v57 }
 0x2ae   :  { %v424_v2 = vsel %vm325_vm3, %v417_v62, %v423_v1 }
 0x2af   :  { %v425_v5 = vsel %vm327_vm4, %v418_v16, %v424_v2 }
 0x2b2   :  { %v408_v63 = vpop.permute.xlu0 %407 }
 0x2b3   :  { %v405_v0 = vpop.permute.xlu1 %404  ;;  %v420_v4 = vperm.slane %v408_v63, %v1569_v57 }
 0x2b4   :  { %v419_v3 = vperm.slane %v405_v0, %v1569_v57 }
 0x2b6   :  { %v426_v6 = vsel %vm2009_vm5, %v419_v3, %v425_v5 }
 0x2b7   :  { %v427_v12 = vsel %vm2008_vm6, %v420_v4, %v426_v6 }
 0x2ba   :  { %v414_v7 = vpop.permute.xlu0 %413 }
 0x2bb   :  { %v422_v8 = vperm.slane %v414_v7, %v1569_v57  ;;  %v411_v10 = vpop.permute.xlu1 %410 }
 0x2bc   :  { %v421_v11 = vperm.slane %v411_v10, %v1569_v57 }
 0x2be   :  { %v428_v17 = vsel %vm2007_vm7, %v421_v11, %v427_v12 }
 0x2bf   :  { %v429_v19 = vsel %vm2006_vm8, %v422_v8, %v428_v17 }
 0x2c0   :  { %v431_v20 = vsel %vm2005_vm9, %v429_v19, 0.0 }
 0x2c1   :  { %432 = vadd.xlane.f32.xlu1 %v431_v20 }
 0x334   :  { %v433_v25 = vpop.xlane.xlu1 %432 }
 0x335   :  { %v435_v27 = vperm.slane %v433_v25, 0  ;;  %v436_v28 = vperm.slane %v433_v25, 1  ;;  %v1631_v29 = vperm.slane %v433_v25, 2  ;;  %v1633_v24 = vperm.slane %v433_v25, 3 }
 0x336   :  { %v1635_v30 = vperm.slane %v433_v25, 5  ;;  %v1638_v31 = vperm.slane %v433_v25, 7  ;;  %v1642_v35 = vperm.slane %v433_v25, 4  ;;  %v1644_v39 = vperm.slane %v433_v25, 6 }
 0x337   :  { %1197 = vrcp.f32 %v435_v27  ;;  %v475_v32 = vand.u32 2147483647, %v436_v28  ;;  %v477_v33 = vand.u32 2147483648, %v436_v28  ;;  %v460_v36 = vand.u32 2147483647, %v435_v27 }
 0x338   :  { %1199 = vrcp.f32 %v436_v28  ;;  %vm471_vm10 = vweird.f32 %v436_v28  ;;  %vm456_vm11 = vweird.f32 %v435_v27  ;;  %v462_v38 = vand.u32 2147483648, %v435_v27 }
 0x339   :  { %1201 = vrcp.f32 %v1631_v29  ;;  %vm1651_vm12 = vcmp.eq.f32.partialorder %v475_v32, 8.507059e+37  ;;  %v478_v41 = vor.u32 1.1754944e-38, %v477_v33  ;;  %vm1658_vm13 = vcmp.eq.f32.partialorder %v460_v36, 8.507059e+37 }
 0x33a   :  { %1203 = vrcp.f32 %v1633_v24  ;;  %vm531_vm14 = vweird.f32 %v1635_v30  ;;  %v463_v63 = vor.u32 1.1754944e-38, %v462_v38  ;;  %v537_v2 = vand.u32 2147483648, %v1635_v30 }
 0x33b   :  { %1205 = vrcp.f32 %v1635_v30  ;;  %v492_v4 = vand.u32 2147483648, %v1631_v29  ;;  %v535_v36 = vand.u32 2147483647, %v1635_v30 }
 0x33c   :  { %1207 = vrcp.f32 %v1638_v31  ;;  %v538_v38 = vor.u32 1.1754944e-38, %v537_v2 }
 0x33d   :  { %v1198_v34 = vpop.eup %1197  ;;  %1209 = vrcp.f32 %v1642_v35 }
 0x33e   :  { %v1200_v26 = vpop.eup %1199  ;;  %v452_v42 = vmul.f32 %v1198_v34, %v435_v27  ;;  %vm457_vm15 = vweird.f32 %v1198_v34  ;;  %1211 = vrcp.f32 %v1644_v39 }
 0x33f   :  { %v1647_v43 = vpop.eup %1201  ;;  %v467_v44 = vmul.f32 %v1200_v26, %v436_v28  ;;  %vm472_vm9 = vweird.f32 %v1200_v26  ;;  %vm458_vm8 = vmor %vm456_vm11, %vm457_vm15  ;;  %v490_v28 = vand.u32 2147483647, %v1631_v29 }
 0x340   :  { %v1649_v45 = vpop.eup %1203  ;;  %v453_v49 = vsub.f32 1.0, %v452_v42  ;;  %v482_v51 = vmul.f32 %v1647_v43, %v1631_v29  ;;  %vm487_vm7 = vweird.f32 %v1647_v43  ;;  %vm473_vm6 = vmor %vm471_vm10, %vm472_vm9  ;;  %vm486_vm9 = vweird.f32 %v1631_v29 }
 0x341   :  { %v468_v50 = vsub.f32 1.0, %v467_v44  ;;  %v1206_v58 = vpop.eup %1205  ;;  %v497_v61 = vmul.f32 %v1649_v45, %v1633_v24  ;;  %v493_v42 = vor.u32 1.1754944e-38, %v492_v4  ;;  %vm491_vm10 = vcmp.eq.f32.partialorder %v490_v28, 8.507059e+37  ;;  %v712_v28 = vld [vmem:[%s1997_s8 + $0x18] sm:$0xff] }
 0x342   :  { %v454_v59 = vmul.f32 %v1198_v34, %v453_v49  ;;  %v483_v60 = vsub.f32 1.0, %v482_v51  ;;  %v527_v0 = vmul.f32 %v1206_v58, %v1635_v30  ;;  %v1666_v1 = vpop.eup %1207  ;;  %vm532_vm5 = vweird.f32 %v1206_v58  ;;  %758 = vmatpush.msrb.mxu3 %v712_v28 }
 0x343   :  { %v469_v62 = vmul.f32 %v1200_v26, %v468_v50  ;;  %v557_v7 = vmul.f32 %v1666_v1, %v1638_v31  ;;  %v498_v11 = vsub.f32 1.0, %v497_v61  ;;  %v1677_v12 = vpop.eup %1209  ;;  %vm562_vm11 = vweird.f32 %v1666_v1 }
 0x344   :  { %v455_v16 = vadd.f32 %v1198_v34, %v454_v59  ;;  %v484_v3 = vmul.f32 %v1647_v43, %v483_v60  ;;  %v528_v6 = vsub.f32 1.0, %v527_v0  ;;  %v512_v29 = vmul.f32 %v1677_v12, %v1642_v35  ;;  %v1212_v49 = vpop.eup %1211 }
 0x345   :  { %v470_v5 = vadd.f32 %v1200_v26, %v469_v62  ;;  %v558_v25 = vsub.f32 1.0, %v557_v7  ;;  %v507_v50 = vand.u32 2147483648, %v1633_v24  ;;  %v505_v59 = vand.u32 2147483647, %v1633_v24 }
 0x346   :  { %v459_v8 = vsel %vm458_vm8, %v1198_v34, %v455_v16  ;;  %v485_v10 = vadd.f32 %v1647_v43, %v484_v3  ;;  %v529_v20 = vmul.f32 %v1206_v58, %v528_v6  ;;  %vm533_vm8 = vmor %vm531_vm14, %vm532_vm5  ;;  %vm502_vm5 = vweird.f32 %v1649_v45 }
 0x347   :  { %v474_v17 = vsel %vm473_vm6, %v1200_v26, %v470_v5  ;;  %v464_v19 = vsel %vm1658_vm13, %v463_v63, %v459_v8  ;;  %vm488_vm6 = vmor %vm486_vm9, %vm487_vm7  ;;  %v499_v26 = vmul.f32 %v1649_v45, %v498_v11  ;;  %v559_v44 = vmul.f32 %v1666_v1, %v558_v25 }
 0x348   :  { %v479_v27 = vsel %vm1651_vm12, %v478_v41, %v474_v17  ;;  %v465_v32 = vmul.f32 %v1589_v40, %v464_v19  ;;  %v530_v34 = vadd.f32 %v1206_v58, %v529_v20  ;;  %v489_v40 = vsel %vm488_vm6, %v1647_v43, %v485_v10 }
 0x349   :  { %v480_v33 = vmul.f32 %v1587_v37, %v479_v27  ;;  %vm536_vm7 = vcmp.eq.f32.partialorder %v535_v36, 8.507059e+37  ;;  %v494_v48 = vsel %vm491_vm10, %v493_v42, %v489_v40  ;;  %v500_v30 = vadd.f32 %v1649_v45, %v499_v26  ;;  %v774_v27 = vld [vmem:[%s1999_s10 + $0x18] sm:$0xff]  ;;  %v711_v36 = vld [vmem:[%s1997_s8 + $0x10] sm:$0xff]  ;;  %v710_v26 = vld [vmem:[%s1997_s8 + $0x8] sm:$0xff] }
 0x34a   :  { %580 = vperm.xlu0 %1154, %v465_v32   ;;  %v534_v37 = vsel %vm533_vm8, %v1206_v58, %v530_v34  ;;  %v513_v43 = vsub.f32 1.0, %v512_v29  ;;  %v560_v51 = vadd.f32 %v1666_v1, %v559_v44  ;;  %v495_v52 = vmul.f32 %v1597_v47, %v494_v48  ;;  %791 = vmatpush.msrb.mxu0 %v774_v27  ;;  %v772_v32 = vld [vmem:[%s1999_s10 + $0x8] sm:$0xff]  ;;  %v1090_v34 = vld [vmem:[%s1997_s8 + $0x38] sm:$0xff] }
 0x34b   :  { %583 = vperm.xlu2 %1153, %v480_v33   ;;  %v539_v41 = vsel %vm536_vm7, %v538_v38, %v534_v37  ;;  %v567_v58 = vand.u32 2147483648, %v1638_v31  ;;  %vm501_vm12 = vweird.f32 %v1633_v24  ;;  %vm561_vm13 = vweird.f32 %v1638_v31  ;;  %759 = vmatpush.msrb.mxu3 %v711_v36  ;;  %v1089_v37 = vld [vmem:[%s1997_s8 + $0x30] sm:$0xff]  ;;  %v1088_v38 = vld [vmem:[%s1997_s8 + $0x28] sm:$0xff] }
 0x34c   :  { %v540_v60 = vmul.f32 %v1603_v53, %v539_v41  ;;  %v565_v61 = vand.u32 2147483647, %v1638_v31  ;;  %vm503_vm14 = vmor %vm501_vm12, %vm502_vm5  ;;  %v514_v63 = vmul.f32 %v1677_v12, %v513_v43  ;;  %v542_v47 = vmul.f32 %v1212_v49, %v1644_v39  ;;  %v1087_v41 = vld [vmem:[%s1997_s8 + $0x20] sm:$0xff]  ;;  %v1119_v43 = vld [vmem:[%s1998_s9 + $0xb8] sm:$0xff] }
 0x34d   :  { %vm563_vm15 = vmor %vm561_vm13, %vm562_vm11  ;;  %v504_v62 = vsel %vm503_vm14, %v1649_v45, %v500_v30  ;;  %v508_v16 = vor.u32 1.1754944e-38, %v507_v50  ;;  %v568_v24 = vor.u32 1.1754944e-38, %v567_v58  ;;  %vm506_vm9 = vcmp.eq.f32.partialorder %v505_v59, 8.507059e+37  ;;  %760 = vmatpush.msrb.mxu3 %v710_v26  ;;  %v1098_v30 = vld [vmem:[%s1998_s9 + $0x78] sm:$0xff]  ;;  %v1118_v58 = vld [vmem:[%s1998_s9 + $0xb0] sm:$0xff] }
 0x34e   :  { %v564_v0 = vsel %vm563_vm15, %v1666_v1, %v560_v51  ;;  %vm566_vm6 = vcmp.eq.f32.partialorder %v565_v61, 8.507059e+37  ;;  %v515_v31 = vadd.f32 %v1677_v12, %v514_v63  ;;  %vm517_vm8 = vweird.f32 %v1677_v12  ;;  %v718_v59 = vld [vmem:[%s1998_s9 + $0x28] sm:$0xff] }
 0x34f   :  { %v509_v53 = vsel %vm506_vm9, %v508_v16, %v504_v62  ;;  %v569_v2 = vsel %vm566_vm6, %v568_v24, %v564_v0  ;;  %v543_v3 = vsub.f32 1.0, %v542_v47  ;;  %v522_v45 = vand.u32 2147483648, %v1642_v35  ;;  %v1096_v63 = vld [vmem:[%s1998_s9 + $0x68] sm:$0xff]  ;;  %v717_v24 = vld [vmem:[%s1998_s9 + $0x20] sm:$0xff] }
 0x350   :  { %v510_v4 = vmul.f32 %v1595_v46, %v509_v53  ;;  %vm516_vm10 = vweird.f32 %v1642_v35  ;;  %v520_v5 = vand.u32 2147483647, %v1642_v35  ;;  %v570_v1 = vmul.f32 %v1609_v55, %v569_v2  ;;  %v1117_v16 = vld [vmem:[%s1998_s9 + $0xa8] sm:$0xff]  ;;  %v1095_v53 = vld [vmem:[%s1998_s9 + $0x60] sm:$0xff] }
 0x351   :  { %vm518_vm7 = vmor %vm516_vm10, %vm517_vm8  ;;  %v544_v7 = vmul.f32 %v1212_v49, %v543_v3  ;;  %v523_v8 = vor.u32 1.1754944e-38, %v522_v45  ;;  %vm547_vm11 = vweird.f32 %v1212_v49  ;;  %v552_v17 = vand.u32 2147483648, %v1644_v39  ;;  %v1116_v45 = vld [vmem:[%s1998_s9 + $0xa0] sm:$0xff] }
 0x352   :  { %586 = vperm.xlu0 %1154, %v495_v52   ;;  %v519_v6 = vsel %vm518_vm7, %v1677_v12, %v515_v31  ;;  %vm521_vm5 = vcmp.eq.f32.partialorder %v520_v5, 8.507059e+37  ;;  %vm546_vm12 = vweird.f32 %v1644_v39  ;;  %v550_v35 = vand.u32 2147483647, %v1644_v39  ;;  %v1097_v52 = vld [vmem:[%s1998_s9 + $0x70] sm:$0xff] }
 0x353   :  { %595 = vperm.xlu2 %1153, %v540_v60   ;;  %v524_v10 = vsel %vm521_vm5, %v523_v8, %v519_v6  ;;  %v545_v11 = vadd.f32 %v1212_v49, %v544_v7  ;;  %vm548_vm13 = vmor %vm546_vm12, %vm547_vm11  ;;  %v553_v19 = vor.u32 1.1754944e-38, %v552_v17  ;;  %v1115_v7 = vld [vmem:[%s1998_s9 + $0x98] sm:$0xff]  ;;  %vm2014_vm15 = vcmask 1044484  }
 0x354   :  { %v525_v46 = vmul.f32 %v1605_v54, %v524_v10  ;;  %vm551_vm14 = vcmp.eq.f32.partialorder %v550_v35, 8.507059e+37  ;;  %v773_v54 = vld [vmem:[%s1999_s10 + $0x10] sm:$0xff]  ;;  %vm2015_vm9 = vcmask 1045509   ;;  %vm2016_vm6 = vcmask 1046534   ;;  %vm2019_vm7 = vmmov %vm2014_vm15 }
 0x355   :  { %v549_v55 = vsel %vm548_vm13, %v1212_v49, %v545_v11  ;;  %792 = vmatpush.msrb.mxu0 %v773_v54  ;;  %v719_v49 = vld [vmem:[%s1998_s9 + $0x30] sm:$0xff]  ;;  %vm2017_vm8 = vcmask 1047559   ;;  %vm2018_vm10 = vcmask 64512   ;;  %vm2020_vm5 = vmmov %vm2015_vm9 }
 0x356   :  { %v554_v12 = vsel %vm551_vm14, %v553_v19, %v549_v55  ;;  %v715_v10 = vld [vmem:[%s1998_s9 + $0x10] sm:$0xff]  ;;  %vm2021_vm11 = vmmov %vm2016_vm6 }
 0x357   :  { %v555_v20 = vmul.f32 %v1611_v56, %v554_v12  ;;  %v771_v56 = vld [vmem:[%s1999_s10] sm:$0xff]  ;;  %793 = vmatpush.msrb.mxu0 %v772_v32  ;;  %v1093_v55 = vld [vmem:[%s1998_s9 + $0x50] sm:$0xff] }
 0x358   :  { %v1114_v19 = vld [vmem:[%s1998_s9 + $0x90] sm:$0xff] }
 0x359   :  { %794 = vmatpush.msrb.mxu0 %v771_v56 }
 0x35a   :  { %589 = vperm.xlu0 %1154, %v510_v4   ;;  %1086 = vmatmul.msk.f32.vlgmr.msrb.gmra.mxu0 %vm77_vm0, %v1442_v9  ;;  %v716_v4 = vld [vmem:[%s1998_s9 + $0x18] sm:$0xff] }
 0x35b   :  { %601 = vperm.xlu2 %1153, %v570_v1   ;;  %845 = vmatpush.msra.mxu0 %v1090_v34  ;;  %v1092_v34 = vld [vmem:[%s1998_s9 + $0x48] sm:$0xff] }
 0x35d   :  { %846 = vmatpush.msra.mxu0 %v1089_v37 }
 0x35f   :  { %847 = vmatpush.msra.mxu0 %v1088_v38  ;;  %v1091_v38 = vld [vmem:[%s1998_s9 + $0x40] sm:$0xff] }
 0x361   :  { %848 = vmatpush.msra.mxu0 %v1087_v41  ;;  %v1105_v41 = vld [vmem:[%s1999_s10 + $0x38] sm:$0xff] }
 0x362   :  { %592 = vperm.xlu0 %1154, %v525_v46  }
 0x363   :  { %911 = vmatpush.msrb.mxu0 %v1119_v43 }
 0x365   :  { %912 = vmatpush.msrb.mxu0 %v1118_v58 }
 0x367   :  { %913 = vmatpush.msrb.mxu0 %v1117_v16  ;;  %v1223_v16 = vld [vmem:[%s1991_s2 + $0x30] sm:$0xff] }
 0x369   :  { %914 = vmatpush.msrb.mxu0 %v1116_v45  ;;  %v1125_v45 = vld [vmem:[%s1999_s10 + $0x50] sm:$0xff] }
 0x36a   :  { %598 = vperm.xlu0 %1154, %v555_v20  }
 0x36b   :  { %915 = vmatpush.msrb.mxu0 %v1115_v7 }
 0x36d   :  { %916 = vmatpush.msrb.mxu0 %v1114_v19 }
 0x3a5   :  { %v1728_v25 = vpop.permute.xlu2 %583 }
 0x3a6   :  { %v629_v29 = vmul.f32 %v1728_v25, %v1480_v18  ;;  %v604_v32 = vperm.slane %v1728_v25, %v1569_v57  ;;  %v713_v25 = vld [vmem:[%s1998_s9] sm:$0xff] }
 0x3a8   :  { %v643_v18 = vsel %vm109_vm1, %v629_v29, 0.0 }
 0x3a9   :  { %v644_v51 = vrot.slane %v643_v18, 4 }
 0x3ab   :  { %v645_v2 = vadd.f32 %v644_v51, %v643_v18  ;;  %v1112_v18 = vld [vmem:[%s1998_s9 + $0x80] sm:$0xff] }
 0x3ad   :  { %v1747_v33 = vpop.permute.xlu2 %595  ;;  %v646_v11 = vrot.slane %v645_v2, 2 }
 0x3ae   :  { %v633_v47 = vmul.f32 %v1747_v33, %v1463_v14  ;;  %v1828_v14 = vld [vmem:[%s1989_s0] sm:$0xff] }
 0x3af   :  { %1100 = vmatmul.msk.f32.vlgmr.msra.gmra.mxu0 %vm77_vm0, %v1828_v14  ;;  %v647_v37 = vadd.f32 %v646_v11, %v645_v2 }
 0x3b0   :  { %v671_v1 = vsel %vm109_vm1, %v633_v47, 0.0 }
 0x3b1   :  { %v672_v12 = vrot.slane %v671_v1, 4  ;;  %v648_v58 = vrot.slane %v647_v37, 1 }
 0x3b5   :  { %v1806_v60 = vpop.permute.xlu2 %601 }
 0x3b6   :  { %v635_v31 = vmul.f32 %v1806_v60, %v1468_v15  ;;  %v1094_v15 = vld [vmem:[%s1998_s9 + $0x58] sm:$0xff] }
 0x3b8   :  { %v685_v17 = vsel %vm109_vm1, %v635_v31, 0.0 }
 0x3b9   :  { %v686_v36 = vrot.slane %v685_v17, 4 }
 0x3bc   :  { %v1736_v39 = vpop.permute.xlu0 %580 }
 0x3bd   :  { %v628_v42 = vmul.f32 %v1736_v39, %v1458_v13  ;;  %v720_v13 = vld [vmem:[%s1998_s9 + $0x38] sm:$0xff]  ;;  %v603_v46 = vperm.slane %v1736_v39, %v1569_v57  ;;  %v714_v39 = vld [vmem:[%s1998_s9 + $0x8] sm:$0xff] }
 0x3be   :  { %731 = vmatpush.msrb.mxu2 %v720_v13 }
 0x3bf   :  { %v636_v48 = vsel %vm109_vm1, %v628_v42, 0.0  ;;  %v611_v42 = vsel %vm323_vm2, %v604_v32, %v603_v46 }
 0x3c0   :  { %v637_v61 = vrot.slane %v636_v48, 4  ;;  %732 = vmatpush.msrb.mxu2 %v719_v49  ;;  %v687_v49 = vadd.f32 %v686_v36, %v685_v17 }
 0x3c2   :  { %733 = vmatpush.msrb.mxu2 %v718_v59  ;;  %v638_v5 = vadd.f32 %v637_v61, %v636_v48  ;;  %v673_v48 = vadd.f32 %v672_v12, %v671_v1  ;;  %v608_v59 = vperm.slane %v1747_v33, %v1569_v57 }
 0x3c4   :  { %v1755_v40 = vpop.permute.xlu0 %586  ;;  %734 = vmatpush.msrb.mxu2 %v717_v24  ;;  %v639_v20 = vrot.slane %v638_v5, 2 }
 0x3c5   :  { %v630_v44 = vmul.f32 %v1755_v40, %v1494_v21  ;;  %v709_v21 = vld [vmem:[%s1997_s8] sm:$0xff]  ;;  %v605_v27 = vperm.slane %v1755_v40, %v1569_v57 }
 0x3c6   :  { %761 = vmatpush.msrb.mxu3 %v709_v21  ;;  %735 = vmatpush.msrb.mxu2 %v716_v4  ;;  %v640_v13 = vadd.f32 %v639_v20, %v638_v5  ;;  %v688_v4 = vrot.slane %v687_v49, 2 }
 0x3c7   :  { %v650_v9 = vsel %vm109_vm1, %v630_v44, 0.0  ;;  %1085 = vmatmul.msk.f32.vlgmr.msrb.gmra.mxu3 %vm77_vm0, %v1828_v14  ;;  %v612_v21 = vsel %vm325_vm3, %v605_v27, %v611_v42  ;;  %v1111_v42 = vld [vmem:[%s1997_s8 + $0x58] sm:$0xff] }
 0x3c8   :  { %821 = vmatpush.msra.mxu3 %v1098_v30  ;;  %v651_v0 = vrot.slane %v650_v9, 4  ;;  %736 = vmatpush.msrb.mxu2 %v715_v10  ;;  %v641_v47 = vrot.slane %v640_v13, 1  ;;  %v689_v19 = vadd.f32 %v688_v4, %v687_v49 }
 0x3ca   :  { %822 = vmatpush.msra.mxu3 %v1097_v52  ;;  %v652_v6 = vadd.f32 %v651_v0, %v650_v9  ;;  %737 = vmatpush.msrb.mxu2 %v714_v39  ;;  %v1104_v52 = vld [vmem:[%s1999_s10 + $0x30] sm:$0xff]  ;;  %v642_v11 = vadd.f32 %v641_v47, %v640_v13  ;;  %v1952_v13 = vld [vmem:[#allocation2] sm:$0xff] }
 0x3cc   :  { %v1795_v50 = vpop.permute.xlu0 %589  ;;  %823 = vmatpush.msra.mxu3 %v1096_v63  ;;  %v653_v56 = vrot.slane %v652_v6, 2  ;;  %738 = vmatpush.msrb.mxu2 %v713_v25  ;;  %v674_v63 = vrot.slane %v673_v48, 2 }
 0x3cd   :  { %v631_v62 = vmul.f32 %v1795_v50, %v1501_v22  ;;  %v606_v28 = vperm.slane %v1795_v50, %v1569_v57 }
 0x3ce   :  { %824 = vmatpush.msra.mxu3 %v1095_v53  ;;  %v654_v9 = vadd.f32 %v653_v56, %v652_v6  ;;  %881 = vmatpush.msra.mxu2 %v1105_v41  ;;  %v610_v53 = vperm.slane %v1806_v60, %v1569_v57  ;;  %v675_v10 = vadd.f32 %v674_v63, %v673_v48  ;;  %v1108_v48 = vld [vmem:[%s1997_s8 + $0x40] sm:$0xff] }
 0x3cf   :  { %v657_v22 = vsel %vm109_vm1, %v631_v62, 0.0  ;;  %v613_v30 = vsel %vm327_vm4, %v606_v28, %v612_v21  ;;  %v690_v28 = vrot.slane %v689_v19, 1  ;;  %v1159_v41 = vld [vmem:[%s2001_s12] ss:$0 sm:$0xff] }
 0x3d0   :  { %v658_v3 = vrot.slane %v657_v22, 4  ;;  %825 = vmatpush.msra.mxu3 %v1094_v15  ;;  %v655_v33 = vrot.slane %v654_v9, 1  ;;  %882 = vmatpush.msra.mxu2 %v1104_v52 }
 0x3d2   :  { %v659_v8 = vadd.f32 %v658_v3, %v657_v22  ;;  %826 = vmatpush.msra.mxu3 %v1093_v55  ;;  %v1103_v22 = vld [vmem:[%s1999_s10 + $0x28] sm:$0xff]  ;;  %v1126_v3 = vld [vmem:[%s1999_s10 + $0x58] sm:$0xff]  ;;  %v656_v17 = vadd.f32 %v655_v33, %v654_v9  ;;  %v649_v55 = vadd.f32 %v648_v58, %v647_v37  ;;  %v1160_v9 = vld [vmem:[%s2000_s11] ss:$0 sm:$0xff] }
 0x3d3   :  { %883 = vmatpush.msra.mxu2 %v1103_v22 }
 0x3d4   :  { %v593_v35 = vpop.permute.xlu0 %592  ;;  %v660_v40 = vrot.slane %v659_v8, 2  ;;  %827 = vmatpush.msra.mxu3 %v1092_v34  ;;  %v700_v39 = vsel %vm323_vm2, %v649_v55, %v642_v11  ;;  %vm2022_vm2 = vmmov %vm2017_vm8  ;;  %v1163_v11 = vld [vmem:[%s2000_s11 + $0x2] ss:$0 sm:$0xff] }
 0x3d5   :  { %v632_v54 = vmul.f32 %v593_v35, %v1508_v23  ;;  %v1113_v23 = vld [vmem:[%s1998_s9 + $0x88] sm:$0xff]  ;;  %v607_v26 = vperm.slane %v593_v35, %v1569_v57  ;;  %v1123_v35 = vld [vmem:[%s1999_s10 + $0x40] sm:$0xff]  ;;  %v701_v32 = vsel %vm325_vm3, %v656_v17, %v700_v39 }
 0x3d6   :  { %917 = vmatpush.msrb.mxu0 %v1113_v23  ;;  %v661_v51 = vadd.f32 %v660_v40, %v659_v8  ;;  %828 = vmatpush.msra.mxu3 %v1091_v38  ;;  %v1124_v8 = vld [vmem:[%s1999_s10 + $0x48] sm:$0xff]  ;;  %v1110_v38 = vld [vmem:[%s1997_s8 + $0x50] sm:$0xff] }
 0x3d7   :  { %v664_v29 = vsel %vm109_vm1, %v632_v54, 0.0  ;;  %v614_v50 = vsel %vm2014_vm15, %v607_v26, %v613_v30  ;;  %v676_v54 = vrot.slane %v675_v10, 1 }
 0x3d8   :  { %v665_v44 = vrot.slane %v664_v29, 4  ;;  %918 = vmatpush.msrb.mxu0 %v1112_v18  ;;  %v615_v31 = vsel %vm2015_vm9, %v608_v59, %v614_v50  ;;  %v662_v5 = vrot.slane %v661_v51, 1  ;;  %971 = vmatpush.msrb.mxu3 %v1126_v3  ;;  %v1109_v18 = vld [vmem:[%s1997_s8 + $0x48] sm:$0xff]  ;;  %s1330_s8 = smov [#allocation8]  }
 0x3d9   :  { %v677_v40 = vadd.f32 %v676_v54, %v675_v10  ;;  %s1054_s27 = sshll.u32 %s1330_s8, 4  ;;  %s1055_s27 = int_to_ptr.vmem [resolvable:$true] %s1054_s27 }
 0x3da   :  { %v666_v43 = vadd.f32 %v665_v44, %v664_v29  ;;  %972 = vmatpush.msrb.mxu3 %v1125_v45  ;;  %v663_v12 = vadd.f32 %v662_v5, %v661_v51  ;;  %v691_v29 = vadd.f32 %v690_v28, %v689_v19  ;;  %v1164_v5 = vld [vmem:[%s2001_s12 + $0x2] ss:$0 sm:$0xff] }
 0x3dc   :  { %v667_v61 = vrot.slane %v666_v43, 2  ;;  %v599_v62 = vpop.permute.xlu0 %598  ;;  %973 = vmatpush.msrb.mxu3 %v1124_v8  ;;  %v702_v34 = vsel %vm327_vm4, %v663_v12, %v701_v32 }
 0x3dd   :  { %v609_v0 = vperm.slane %v599_v62, %v1569_v57  ;;  %v634_v24 = vmul.f32 %v1223_v16, %v599_v62  ;;  %v1102_v57 = vld [vmem:[%s1999_s10 + $0x20] sm:$0xff] }
 0x3de   :  { %v668_v2 = vadd.f32 %v667_v61, %v666_v43  ;;  %884 = vmatpush.msra.mxu2 %v1102_v57  ;;  %974 = vmatpush.msrb.mxu3 %v1123_v35  ;;  %v1161_v61 = vld [vmem:[%s2000_s11 + $0x1] ss:$0 sm:$0xff]  ;;  %s1331_s11 = smov [#allocation5]  }
 0x3df   :  { %v616_v1 = vsel %vm2016_vm6, %v609_v0, %v615_v31  ;;  %v678_v6 = vsel %vm109_vm1, %v634_v24, 0.0  ;;  %v1162_v62 = vld [vmem:[%s2001_s12 + $0x1] ss:$0 sm:$0xff]  ;;  %s1032_s12 = sshll.u32 %s1331_s11, 4  ;;  %s1033_s12 = int_to_ptr.vmem [resolvable:$true] %s1032_s12 }
 0x3e0   :  { %v669_v60 = vrot.slane %v668_v2, 1  ;;  %v617_v15 = vsel %vm2017_vm8, %v610_v53, %v616_v1  ;;  %v679_v7 = vrot.slane %v678_v6, 4 }
 0x3e1   :  { %619 = vst.msk [vmem:[#allocation8] sm:$0xff] %vm2018_vm10, %v617_v15 }
 0x3e2   :  { %v680_v46 = vadd.f32 %v679_v7, %v678_v6  ;;  %v670_v20 = vadd.f32 %v669_v60, %v668_v2 }
 0x3e4   :  { %v681_v27 = vrot.slane %v680_v46, 2  ;;  %v703_v36 = vsel %vm2019_vm7, %v670_v20, %v702_v34 }
 0x3e5   :  { %v704_v25 = vsel %vm2020_vm5, %v677_v40, %v703_v36 }
 0x3e6   :  { %v682_v56 = vadd.f32 %v681_v27, %v680_v46 }
 0x3e8   :  { %v683_v23 = vrot.slane %v682_v56, 1 }
 0x3ea   :  { %v684_v26 = vadd.f32 %v683_v23, %v682_v56 }
 0x3ec   :  { %v705_v37 = vsel %vm2021_vm11, %v684_v26, %v704_v25 }
 0x3ed   :  { %v706_v44 = vsel %vm2022_vm2, %v691_v29, %v705_v37 }
 0x3ee   :  { %1084 = vmatmul.msk.f32.vlgmr.msrb.gmra.mxu2 %vm109_vm1, %v706_v44  ;;  %708 = vst.msk [vmem:[#allocation6] sm:$0xff] %vm109_vm1, %v706_v44  ;;  %1099 = vmatmul.msk.f32.vlgmr.msra.gmra.mxu3 %vm109_vm1, %v706_v44 }
 0x3ef   :  { %1120 = vmatmul.msk.f32.vlgmr.msrb.gmra.mxu0 %vm109_vm1, %v706_v44  ;;  %935 = vmatpush.msrb.mxu2 %v1111_v42  ;;  %1048 = dma.vmem_to_hbm [thread:$0]  %s1044_s4, 128, %s1046_s25, [#allocation7]  }
 0x3f0   :  { %1059 = dma.vmem_to_hbm [thread:$0]  %s1055_s27, 128, %s1057_s1, [#allocation7]  }
 0x3f1   :  { %936 = vmatpush.msrb.mxu2 %v1110_v38 }
 0x3f3   :  { %937 = vmatpush.msrb.mxu2 %v1109_v18 }
 0x3f5   :  { %938 = vmatpush.msrb.mxu2 %v1108_v48 }
 0x3f6   :  { %1107 = vmatmul.msk.f32.vlgmr.msra.gmra.mxu2 %vm77_vm0, %v1952_v13  ;;  %1128 = vmatmul.msk.f32.vlgmr.msrb.gmra.mxu3 %vm77_vm0, %v1952_v13 }
 0x3fe   :  { %1121 = vmatmul.msk.f32.vlgmr.msrb.gmra.mxu2 %vm77_vm0, %v1828_v14  ;;  %v796_v14 = vpop.f32.mrf.mxu0 }
 0x3ff   :  { %v797_v43 = vadd.f32 %v1159_v41, %v796_v14 }
 0x42c   :  { %v850_v52 = vpop.f32.mrf.mxu0 }
 0x44a   :  { %v763_v21 = vpop.f32.mrf.mxu3 }
 0x46c   :  { %v920_v60 = vpop.f32.mrf.mxu0 }
 0x471   :  { %v740_v30 = vpop.f32.mrf.mxu2  ;;  %v830_v51 = vpop.f32.mrf.mxu3 }
 0x472   :  { %v764_v49 = vadd.f32 %v763_v21, %v740_v30  ;;  %v851_v59 = vadd.f32 %v850_v52, %v830_v51 }
 0x474   :  { %v770_v50 = vadd.f32 %v1160_v9, %v764_v49  ;;  %v858_v0 = vadd.f32 %v1161_v61, %v851_v59 }
 0x476   :  { %v979_v58 = vadd.f32 %v797_v43, %v770_v50 }
 0x478   :  { %v1129_v63 = vmul.f32 -1.442695, %v979_v58 }
 0x479   :  { %v886_v47 = vpop.f32.mrf.mxu2  ;;  %v976_v6 = vpop.f32.mrf.mxu3 }
 0x47a   :  { %1213 = vpow2.f32 %v1129_v63  ;;  %v887_v16 = vadd.f32 %v1162_v62, %v886_v47  ;;  %v977_v46 = vadd.f32 %v1164_v5, %v976_v6 }
 0x47c   :  { %v999_v24 = vadd.f32 %v887_v16, %v858_v0 }
 0x47e   :  { %v1130_v22 = vmul.f32 -1.442695, %v999_v24 }
 0x480   :  { %v1214_v53 = vpop.eup %1213  ;;  %1215 = vpow2.f32 %v1130_v22 }
 0x481   :  { %v983_v33 = vadd.f32 1.0, %v1214_v53  ;;  %v940_v4 = vpop.f32.mrf.mxu2 }
 0x482   :  { %v941_v10 = vadd.f32 %v940_v4, %v920_v60 }
 0x483   :  { %1217 = vrcp.f32 %v983_v33  ;;  %v995_v57 = vand.u32 2147483648, %v983_v33  ;;  %v993_v7 = vand.u32 2147483647, %v983_v33  ;;  %vm989_vm3 = vweird.f32 %v983_v33 }
 0x484   :  { %v948_v20 = vadd.f32 %v1163_v11, %v941_v10 }
 0x485   :  { %v996_v55 = vor.u32 1.1754944e-38, %v995_v57  ;;  %vm994_vm12 = vcmp.eq.f32.partialorder %v993_v7, 8.507059e+37 }
 0x486   :  { %v1216_v2 = vpop.eup %1215 }
 0x487   :  { %v1003_v31 = vadd.f32 1.0, %v1216_v2 }
 0x489   :  { %v1218_v3 = vpop.eup %1217  ;;  %1219 = vrcp.f32 %v1003_v31  ;;  %v1015_v32 = vand.u32 2147483648, %v1003_v31  ;;  %v1013_v56 = vand.u32 2147483647, %v1003_v31  ;;  %vm1009_vm14 = vweird.f32 %v1003_v31 }
 0x48a   :  { %v985_v45 = vmul.f32 %v1218_v3, %v983_v33  ;;  %vm990_vm1 = vweird.f32 %v1218_v3 }
 0x48b   :  { %vm991_vm4 = vmor %vm989_vm3, %vm990_vm1  ;;  %v1016_v36 = vor.u32 1.1754944e-38, %v1015_v32  ;;  %vm1014_vm9 = vcmp.eq.f32.partialorder %v1013_v56, 8.507059e+37 }
 0x48c   :  { %v986_v1 = vsub.f32 1.0, %v985_v45 }
 0x48e   :  { %v987_v15 = vmul.f32 %v1218_v3, %v986_v1 }
 0x48f   :  { %v1220_v8 = vpop.eup %1219 }
 0x490   :  { %v1005_v17 = vmul.f32 %v1220_v8, %v1003_v31  ;;  %v988_v35 = vadd.f32 %v1218_v3, %v987_v15  ;;  %vm1010_vm13 = vweird.f32 %v1220_v8 }
 0x491   :  { %vm1011_vm15 = vmor %vm1009_vm14, %vm1010_vm13 }
 0x492   :  { %v1006_v19 = vsub.f32 1.0, %v1005_v17  ;;  %v992_v12 = vsel %vm991_vm4, %v1218_v3, %v988_v35 }
 0x493   :  { %v997_v27 = vsel %vm994_vm12, %v996_v55, %v992_v12 }
 0x494   :  { %v1019_v54 = vmul.f32 %v997_v27, %v977_v46  ;;  %v1007_v39 = vmul.f32 %v1220_v8, %v1006_v19 }
 0x496   :  { %v1020_v28 = vadd.f32 %v1019_v54, %v948_v20  ;;  %v1008_v34 = vadd.f32 %v1220_v8, %v1007_v39 }
 0x498   :  { %1221 = vtanh.f32 %v1020_v28  ;;  %v1012_v23 = vsel %vm1011_vm15, %v1220_v8, %v1008_v34 }
 0x499   :  { %v1017_v40 = vsel %vm1014_vm9, %v1016_v36, %v1012_v23 }
 0x49a   :  { %v1022_v26 = vsub.f32 1.0, %v1017_v40  ;;  %v1024_v37 = vmul.f32 %v1952_v13, %v1017_v40 }
 0x49e   :  { %v1222_v29 = vpop.eup %1221 }
 0x49f   :  { %v1023_v25 = vmul.f32 %v1222_v29, %v1022_v26 }
 0x4a1   :  { %v1025_v42 = vadd.f32 %v1024_v37, %v1023_v25 }
 0x4a3   :  { %1026 = vst.msk [vmem:[#allocation5] sm:$0xff] %vm77_vm0, %v1025_v42 }
 0x4a4   :  { %1037 = dma.vmem_to_hbm [thread:$0]  %s1033_s12, 128, %s1035_s21, [#allocation4]  }
 0x4a5   :  { %1323 = dma.done.wait [#allocation4], 128  }
 0x4a6   :  { %1324 = vsyncadd [#allocation4], 4294967168 }
 0x4a7   :  { %1325 = dma.done.wait [#allocation7], 256  }
 0x4a8   :  { %1326 = vsyncadd [#allocation7], 4294967040 }
 0x4a9   :  { %1072 = vsyncpa [#allocation3], 1 }
 0x4aa   :  { %1073 = vsyncpa [#allocation4], 1 }
 0x4ab   :  { %1074 = vsyncpa [#allocation7], 1 }

</bundles_post_ra>
